<compile_context>
chip_gen: v7x
topology: tpu7x:2x2x1
jax: 0.10.0
libtpu: 0.0.40
codegen_flags: <defaults>
</compile_context>

<pallas_src>
import functools
import math

import jax
import jax.numpy as jnp
from jax import lax
from jax.experimental import pallas as pl
from jax.experimental.pallas import tpu as pltpu

# Toy config, structurally identical to CLIP(49408, 768, 77, 12 heads, 12 layers).
N_VOCAB = 512
N_EMBD = 128
N_TOKEN = 16
N_HEAD = 4
N_LAYER = 4
LN_EPS = 1e-5
NEG_INF = -1e9                      # finite additive mask value
MATMUL_DTYPE = jnp.bfloat16         # MXU operand dtype; accumulation stays f32


def _layernorm(x, w, b):
    # PyTorch nn.LayerNorm semantics: biased variance, eps inside the sqrt.
    mu = jnp.mean(x, axis=-1, keepdims=True)
    var = jnp.mean(jnp.square(x - mu), axis=-1, keepdims=True)
    return (x - mu) * lax.rsqrt(var + LN_EPS) * w + b


def _clip_fused_kernel(n_head,
                       tok_ref,                     # SMEM (M,) int32 (scalar prefetch)
                       emb_ref,                     # HBM  (V, E) f32 (pl.ANY)
                       pos_ref,                     # VMEM (M, E) f32 (pre-tiled)
                       mask_ref,                    # VMEM (M, M) f32 (additive)
                       lnf_ref,                     # VMEM (2, E) f32 (final LN w, b)
                       wqkv_ref,                    # VMEM (1, E, 3E) bf16
                       wo_ref,                      # VMEM (1, E, E)  bf16
                       w1_ref,                      # VMEM (1, E, 4E) bf16
                       w2_ref,                      # VMEM (1, 4E, E) bf16
                       vecs_ref,                    # VMEM (1, 6, E) f32
                       bqkv_ref,                    # VMEM (1, 1, 3E) f32
                       b1_ref,                      # VMEM (1, 1, 4E) f32
                       out_ref,                     # VMEM (M, E) f32
                       x_vmem):                     # scratch (M, E) f32
    layer = pl.program_id(0)
    M, E = pos_ref.shape
    d = E // n_head

    # ---- token-embedding row gather (HBM -> VMEM DMA) + position add, step 0 ----
    @pl.when(layer == 0)
    def _():
        @pl.loop(0, M)
        def _(i):
            pltpu.sync_copy(emb_ref.at[pl.ds(tok_ref[i], 1)],
                            x_vmem.at[pl.ds(i, 1)])
        x_vmem[...] = x_vmem[...] + pos_ref[...]

    x = x_vmem[...]                                  # (M, E) f32 resident activations
    amask = mask_ref[...]                            # layer-invariant, fetched once
    vecs = vecs_ref[0]                               # (6, E): ln1w, ln1b, ln2w, ln2b, b_o, b_fc2

    # ---- LayerNorm 1 + causal multi-head self-attention ----
    h = _layernorm(x, vecs[0:1, :], vecs[1:2, :]).astype(MATMUL_DTYPE)
    # fused lane-dense QKV projection; 1/sqrt(d_head) folded into the Q columns.
    qkv = jnp.dot(h, wqkv_ref[0], preferred_element_type=jnp.float32) + bqkv_ref[0]

    heads = []
    for hi in range(n_head):                         # static slices of the fused QKV
        q = qkv[:, hi * d:(hi + 1) * d].astype(MATMUL_DTYPE)
        k = qkv[:, E + hi * d:E + (hi + 1) * d].astype(MATMUL_DTYPE)
        v = qkv[:, 2 * E + hi * d:2 * E + (hi + 1) * d].astype(MATMUL_DTYPE)
        s = lax.dot_general(q, k, (((1,), (1,)), ((), ())),
                            preferred_element_type=jnp.float32) + amask
        m = jnp.max(s, axis=-1, keepdims=True)
        p = jnp.exp(s - m)
        p = p * pl.reciprocal(jnp.sum(p, axis=-1, keepdims=True), approx=True)
        heads.append(jnp.dot(p.astype(MATMUL_DTYPE), v,
                             preferred_element_type=jnp.float32))
    attn_cat = jnp.concatenate(heads, axis=-1).astype(MATMUL_DTYPE)   # (M, E)
    attn = jnp.dot(attn_cat, wo_ref[0],
                   preferred_element_type=jnp.float32) + vecs[4:5, :]
    x = x + attn                                     # residual 1

    # ---- LayerNorm 2 + MLP with QuickGELU (elementwise kept f32: v5e-safe) ----
    h2 = _layernorm(x, vecs[2:3, :], vecs[3:4, :]).astype(MATMUL_DTYPE)
    a = jnp.dot(h2, w1_ref[0], preferred_element_type=jnp.float32) + b1_ref[0]
    a = a * jax.nn.sigmoid(1.702 * a)                # QuickGELU
    y = jnp.dot(a.astype(MATMUL_DTYPE), w2_ref[0],
                preferred_element_type=jnp.float32) + vecs[5:6, :]
    x_vmem[...] = x + y                              # residual 2

    # ---- final LayerNorm + single HBM writeback (last layer only) ----
    @pl.when(layer == pl.num_programs(0) - 1)
    def _():
        lnf = lnf_ref[...]
        out_ref[...] = _layernorm(x_vmem[...], lnf[0:1, :], lnf[1:2, :])


def _per_layer_spec(*tail):
    nd = len(tail) + 1
    return pl.BlockSpec((1,) + tuple(tail),
                        lambda l, tok, nd=nd: (l,) + (0,) * (nd - 1))


def _const_spec(*shape):
    nd = len(shape)
    return pl.BlockSpec(tuple(shape), lambda l, tok, nd=nd: (0,) * nd)


def clip_forward(tokens, params, n_head=N_HEAD):
    B, T = tokens.shape
    E = params["pos"].shape[1]
    L = params["w_qkv"].shape[0]
    M = B * T

    tok_flat = tokens.reshape(M).astype(jnp.int32)
    pos_tiled = jnp.tile(params["pos"], (B, 1))                       # (M, E)

    # Layer-invariant block-diagonal causal mask over flattened (batch*seq) rows.
    row = jnp.arange(M, dtype=jnp.int32)
    allowed = jnp.logical_and((row[:, None] // T) == (row[None, :] // T),
                              row[None, :] <= row[:, None])
    mask = jnp.where(allowed, 0.0, NEG_INF).astype(jnp.float32)       # (M, M)

    kernel = functools.partial(_clip_fused_kernel, n_head)

    grid_spec = pltpu.PrefetchScalarGridSpec(
        num_scalar_prefetch=1,                      # token ids -> SMEM
        grid=(L,),
        in_specs=[
            pl.BlockSpec(memory_space=pl.ANY),      # embedding table stays in HBM
            _const_spec(M, E),                      # pre-tiled position embedding
            _const_spec(M, M),                      # additive causal mask
            _const_spec(2, E),                      # final LN (w, b)
            _per_layer_spec(E, 3 * E),              # fused W_qkv (bf16)
            _per_layer_spec(E, E),                  # W_out      (bf16)
            _per_layer_spec(E, 4 * E),              # W_fc1      (bf16)
            _per_layer_spec(4 * E, E),              # W_fc2      (bf16)
            _per_layer_spec(6, E),                  # ln1 w/b, ln2 w/b, b_out, b_fc2
            _per_layer_spec(1, 3 * E),              # fused b_qkv (Q-scale folded)
            _per_layer_spec(1, 4 * E),              # b_fc1
        ],
        out_specs=pl.BlockSpec((M, E), lambda l, tok: (0, 0)),
        scratch_shapes=[pltpu.VMEM((M, E), jnp.float32)],   # resident activations
    )

    out = pl.pallas_call(
        kernel,
        out_shape=jax.ShapeDtypeStruct((M, E), jnp.float32),
        grid_spec=grid_spec,
        compiler_params=pltpu.CompilerParams(
            dimension_semantics=("arbitrary",),     # layer axis is sequential
            vmem_limit_bytes=32 * 1024 * 1024),
    )(tok_flat, params["emb"], pos_tiled, mask, params["lnf"],
      params["w_qkv"], params["w_o"], params["w_fc1"], params["w_fc2"],
      params["vecs"], params["b_qkv"], params["b_fc1"])
    return out.reshape(B, T, E)


def init_params(key):
    E, H, L, T, V = N_EMBD, N_HEAD, N_LAYER, N_TOKEN, N_VOCAB
    d = E // H
    q_scale = 1.0 / math.sqrt(d)

    def nrm(k, shape, scale=0.02):
        return scale * jax.random.normal(k, shape, dtype=jnp.float32)

    keys = jax.random.split(key, 2 + L)
    wqkv, bqkv, wo, w1, b1, w2, vecs = [], [], [], [], [], [], []
    for i in range(L):
        lk = jax.random.split(keys[2 + i], 12)
        wq = nrm(lk[0], (E, E)) * q_scale            # fold 1/sqrt(d_head) into Q proj
        wk = nrm(lk[1], (E, E))
        wv = nrm(lk[2], (E, E))
        bq = nrm(lk[3], (E,), 0.01) * q_scale
        bk = nrm(lk[4], (E,), 0.01)
        bv = nrm(lk[5], (E,), 0.01)
        wo_i = nrm(lk[6], (E, E))
        bo_i = nrm(lk[7], (E,), 0.01)
        w1_i = nrm(lk[8], (E, 4 * E))
        b1_i = nrm(lk[9], (4 * E,), 0.01)
        w2_i = nrm(lk[10], (4 * E, E))
        b2_i = nrm(lk[11], (E,), 0.01)

        wqkv.append(jnp.concatenate([wq, wk, wv], axis=1))            # (E, 3E)
        bqkv.append(jnp.concatenate([bq, bk, bv])[None, :])           # (1, 3E)
        wo.append(wo_i)
        w1.append(w1_i)
        b1.append(b1_i[None, :])                                      # (1, 4E)
        w2.append(w2_i)
        ones = jnp.ones((E,), jnp.float32)
        zeros = jnp.zeros((E,), jnp.float32)
        vecs.append(jnp.stack([ones, zeros, ones, zeros, bo_i, b2_i], axis=0))  # (6, E)

    def st(xs, dtype):
        return jnp.stack(xs, axis=0).astype(dtype)

    return {
        "emb": nrm(keys[0], (V, E)),                                  # f32, stays in HBM
        "pos": nrm(keys[1], (T, E), 0.01),
        "lnf": jnp.stack([jnp.ones((E,), jnp.float32),
                          jnp.zeros((E,), jnp.float32)], axis=0),     # (2, E)
        "w_qkv": st(wqkv, MATMUL_DTYPE),
        "w_o": st(wo, MATMUL_DTYPE),
        "w_fc1": st(w1, MATMUL_DTYPE),
        "w_fc2": st(w2, MATMUL_DTYPE),
        "vecs": st(vecs, jnp.float32),
        "b_qkv": st(bqkv, jnp.float32),
        "b_fc1": st(b1, jnp.float32),
    }


if __name__ == "__main__":
    root = jax.random.PRNGKey(0)
    k_tok, k_par = jax.random.split(root)
    params = init_params(k_par)
    tokens = jax.random.randint(k_tok, (2, N_TOKEN), 0, N_VOCAB, dtype=jnp.int32)

    fwd = jax.jit(clip_forward)
    out = jax.block_until_ready(fwd(tokens, params))

    assert out.shape == (2, N_TOKEN, N_EMBD), out.shape
    assert out.dtype == jnp.float32
    assert bool(jnp.all(jnp.isfinite(out)))
    print("KERNEL_OK")
</pallas_src>

<mosaic_0001>
module attributes {stable_mosaic.version = 11 : i64} {
  func.func @_clip_fused_kernel(%arg0: i32, %arg1: memref<32xi32, #tpu.memory_space<smem>>, %arg2: memref<512x128xf32, #tpu.memory_space<any>>, %arg3: memref<32x128xf32, #tpu.memory_space<vmem>>, %arg4: memref<32x32xf32, #tpu.memory_space<vmem>>, %arg5: memref<2x128xf32, #tpu.memory_space<vmem>>, %arg6: memref<1x128x384xbf16, #tpu.memory_space<vmem>>, %arg7: memref<1x128x128xbf16, #tpu.memory_space<vmem>>, %arg8: memref<1x128x512xbf16, #tpu.memory_space<vmem>>, %arg9: memref<1x512x128xbf16, #tpu.memory_space<vmem>>, %arg10: memref<1x6x128xf32, #tpu.memory_space<vmem>>, %arg11: memref<1x1x384xf32, #tpu.memory_space<vmem>>, %arg12: memref<1x1x512xf32, #tpu.memory_space<vmem>>, %arg13: memref<32x128xf32, #tpu.memory_space<vmem>>, %arg14: memref<32x128xf32, #tpu.memory_space<vmem>>) attributes {dimension_semantics = [#tpu.dimension_semantics<arbitrary>], iteration_bounds = array<i64: 4>, scalar_prefetch = 1 : i64, scratch_operands = 1 : i64, tpu.core_type = #tpu.core_type<tc>, window_params = [{}, {pipeline_mode = #tpu.pipeline_mode<synchronous>, transform_indices = @transform_1, window_bounds = array<i64: 32, 128>}, {pipeline_mode = #tpu.pipeline_mode<synchronous>, transform_indices = @transform_2, window_bounds = array<i64: 32, 32>}, {pipeline_mode = #tpu.pipeline_mode<synchronous>, transform_indices = @transform_3, window_bounds = array<i64: 2, 128>}, {transform_indices = @transform_4, window_bounds = array<i64: 1, 128, 384>}, {transform_indices = @transform_5, window_bounds = array<i64: 1, 128, 128>}, {transform_indices = @transform_6, window_bounds = array<i64: 1, 128, 512>}, {transform_indices = @transform_7, window_bounds = array<i64: 1, 512, 128>}, {transform_indices = @transform_8, window_bounds = array<i64: 1, 6, 128>}, {transform_indices = @transform_9, window_bounds = array<i64: 1, 1, 384>}, {transform_indices = @transform_10, window_bounds = array<i64: 1, 1, 512>}, {pipeline_mode = #tpu.pipeline_mode<synchronous>, transform_indices = @transform_11, window_bounds = array<i64: 32, 128>}]} {
    %c0_i32 = arith.constant 0 : i32
    %0 = arith.cmpi eq, %arg0, %c0_i32 : i32
    %1 = arith.extui %0 : i1 to i32
    %c0_i32_0 = arith.constant 0 : i32
    %2 = arith.cmpi ne, %1, %c0_i32_0 : i32
    scf.if %2 {
      %c0_i32_59 = arith.constant 0 : i32
      %c32_i32 = arith.constant 32 : i32
      %180 = arith.addi %c0_i32_59, %c32_i32 : i32
      %c1_i32 = arith.constant 1 : i32
      scf.for %arg15 = %c0_i32_59 to %180 step %c1_i32  : i32 {
        %c1_i32_67 = arith.constant 1 : i32
        %185 = arith.muli %arg15, %c1_i32_67 : i32
        %c0_i32_68 = arith.constant 0 : i32
        %186 = arith.addi %c0_i32_68, %185 : i32
        %187 = arith.index_cast %186 : i32 to index
        %188 = memref.load %arg1[%187] : memref<32xi32, #tpu.memory_space<smem>>
        "tpu.region"() ({
          %189 = tpu.sem_alloc : memref<!tpu.dma_semaphore, #tpu.memory_space<semaphore_mem>>
          %c0_i32_69 = arith.constant 0 : i32
          %190 = tpu.memref_slice %arg2[%188, %c0_i32_69] : memref<512x128xf32, #tpu.memory_space<any>> -> memref<1x128xf32, #tpu.memory_space<any>>
          %c0_i32_70 = arith.constant 0 : i32
          %191 = tpu.memref_slice %arg14[%186, %c0_i32_70] : memref<32x128xf32, #tpu.memory_space<vmem>> -> memref<1x128xf32, #tpu.memory_space<vmem>>
          tpu.enqueue_dma source(%190 : memref<1x128xf32, #tpu.memory_space<any>>) target(%191 : memref<1x128xf32, #tpu.memory_space<vmem>>) target_semaphore(%189 : memref<!tpu.dma_semaphore, #tpu.memory_space<semaphore_mem>>)
          %c0_i32_71 = arith.constant 0 : i32
          %192 = tpu.memref_slice %arg2[%188, %c0_i32_71] : memref<512x128xf32, #tpu.memory_space<any>> -> memref<1x128xf32, #tpu.memory_space<any>>
          %c0_i32_72 = arith.constant 0 : i32
          %193 = tpu.memref_slice %arg14[%186, %c0_i32_72] : memref<32x128xf32, #tpu.memory_space<vmem>> -> memref<1x128xf32, #tpu.memory_space<vmem>>
          tpu.wait_dma2 semaphore(%189 : memref<!tpu.dma_semaphore, #tpu.memory_space<semaphore_mem>>) src(%192 : memref<1x128xf32, #tpu.memory_space<any>>) dst(%193 : memref<1x128xf32, #tpu.memory_space<vmem>>)
          tpu.yield
        }) : () -> ()
      }
      %c32_i32_60 = arith.constant 32 : i32
      %c0_61 = arith.constant 0 : index
      %c0_62 = arith.constant 0 : index
      %181 = vector.load %arg14[%c0_61, %c0_62] : memref<32x128xf32, #tpu.memory_space<vmem>>, vector<32x128xf32>
      %c0_63 = arith.constant 0 : index
      %c0_64 = arith.constant 0 : index
      %182 = vector.load %arg3[%c0_63, %c0_64] : memref<32x128xf32, #tpu.memory_space<vmem>>, vector<32x128xf32>
      %183 = arith.addf %181, %182 : vector<32x128xf32>
      %c0_65 = arith.constant 0 : index
      %c0_66 = arith.constant 0 : index
      %184 = vector.load %arg14[%c0_65, %c0_66] : memref<32x128xf32, #tpu.memory_space<vmem>>, vector<32x128xf32>
      tpu.vector_store %arg14[%c0_65, %c0_66], %183 {strides = array<i32>} : memref<32x128xf32, #tpu.memory_space<vmem>>, vector<32x128xf32>,
    } else {
    }
    %c0 = arith.constant 0 : index
    %c0_1 = arith.constant 0 : index
    %3 = vector.load %arg14[%c0, %c0_1] : memref<32x128xf32, #tpu.memory_space<vmem>>, vector<32x128xf32>
    %c0_2 = arith.constant 0 : index
    %c0_3 = arith.constant 0 : index
    %4 = vector.load %arg4[%c0_2, %c0_3] : memref<32x32xf32, #tpu.memory_space<vmem>>, vector<32x32xf32>
    %c0_4 = arith.constant 0 : index
    %c0_5 = arith.constant 0 : index
    %c0_6 = arith.constant 0 : index
    %5 = vector.load %arg10[%c0_4, %c0_5, %c0_6] : memref<1x6x128xf32, #tpu.memory_space<vmem>>, vector<1x6x128xf32>
    %6 = vector.shape_cast %5 : vector<1x6x128xf32> to vector<6x128xf32>
    %7 = vector.extract_strided_slice %6 {offsets = [0, 0], sizes = [1, 128], strides = [1, 1]} : vector<6x128xf32> to vector<1x128xf32>
    %8 = vector.extract_strided_slice %6 {offsets = [1, 0], sizes = [1, 128], strides = [1, 1]} : vector<6x128xf32> to vector<1x128xf32>
    %cst = arith.constant dense<0.000000e+00> : vector<32xf32>
    %9 = vector.multi_reduction <add>, %3, %cst [1] : vector<32x128xf32> to vector<32xf32>
    %10 = vector.shape_cast %9 : vector<32xf32> to vector<32x1xf32>
    %cst_7 = arith.constant 1.280000e+02 : f32
    %11 = vector.broadcast %cst_7 : f32 to vector<32x1xf32>
    %12 = arith.divf %10, %11 : vector<32x1xf32>
    %13 = vector.broadcast %12 : vector<32x1xf32> to vector<32x128xf32>
    %14 = arith.subf %3, %13 : vector<32x128xf32>
    %15 = arith.mulf %14, %14 : vector<32x128xf32>
    %cst_8 = arith.constant dense<0.000000e+00> : vector<32xf32>
    %16 = vector.multi_reduction <add>, %15, %cst_8 [1] : vector<32x128xf32> to vector<32xf32>
    %17 = vector.shape_cast %16 : vector<32xf32> to vector<32x1xf32>
    %cst_9 = arith.constant 1.280000e+02 : f32
    %18 = vector.broadcast %cst_9 : f32 to vector<32x1xf32>
    %19 = arith.divf %17, %18 : vector<32x1xf32>
    %20 = vector.broadcast %12 : vector<32x1xf32> to vector<32x128xf32>
    %21 = arith.subf %3, %20 : vector<32x128xf32>
    %cst_10 = arith.constant 9.99999974E-6 : f32
    %22 = vector.broadcast %cst_10 : f32 to vector<32x1xf32>
    %23 = arith.addf %19, %22 : vector<32x1xf32>
    %24 = math.rsqrt %23 : vector<32x1xf32>
    %25 = vector.broadcast %24 : vector<32x1xf32> to vector<32x128xf32>
    %26 = arith.mulf %21, %25 : vector<32x128xf32>
    %27 = vector.broadcast %7 : vector<1x128xf32> to vector<32x128xf32>
    %28 = arith.mulf %26, %27 : vector<32x128xf32>
    %29 = vector.broadcast %8 : vector<1x128xf32> to vector<32x128xf32>
    %30 = arith.addf %28, %29 : vector<32x128xf32>
    %31 = arith.truncf %30 : vector<32x128xf32> to vector<32x128xbf16>
    %c0_11 = arith.constant 0 : index
    %c0_12 = arith.constant 0 : index
    %c0_13 = arith.constant 0 : index
    %32 = vector.load %arg6[%c0_11, %c0_12, %c0_13] : memref<1x128x384xbf16, #tpu.memory_space<vmem>>, vector<1x128x384xbf16>
    %33 = vector.shape_cast %32 : vector<1x128x384xbf16> to vector<128x384xbf16>
    %cst_14 = arith.constant dense<0.000000e+00> : vector<32x384xf32>
    %34 = tpu.matmul %31, %33, %cst_14 {dimension_numbers = #tpu.dot_dimension_numbers<[1], [0], [0], [1], [0, 0, 1, 1], [], []>} : vector<32x128xbf16>, vector<128x384xbf16>, vector<32x384xf32> -> vector<32x384xf32>
    %c0_15 = arith.constant 0 : index
    %c0_16 = arith.constant 0 : index
    %c0_17 = arith.constant 0 : index
    %35 = vector.load %arg11[%c0_15, %c0_16, %c0_17] : memref<1x1x384xf32, #tpu.memory_space<vmem>>, vector<1x1x384xf32>
    %36 = vector.shape_cast %35 : vector<1x1x384xf32> to vector<1x384xf32>
    %37 = vector.broadcast %36 : vector<1x384xf32> to vector<32x384xf32>
    %38 = arith.addf %34, %37 : vector<32x384xf32>
    %39 = vector.extract_strided_slice %38 {offsets = [0, 0], sizes = [32, 32], strides = [1, 1]} : vector<32x384xf32> to vector<32x32xf32>
    %40 = arith.truncf %39 : vector<32x32xf32> to vector<32x32xbf16>
    %41 = vector.extract_strided_slice %38 {offsets = [0, 128], sizes = [32, 32], strides = [1, 1]} : vector<32x384xf32> to vector<32x32xf32>
    %42 = arith.truncf %41 : vector<32x32xf32> to vector<32x32xbf16>
    %43 = vector.extract_strided_slice %38 {offsets = [0, 256], sizes = [32, 32], strides = [1, 1]} : vector<32x384xf32> to vector<32x32xf32>
    %44 = arith.truncf %43 : vector<32x32xf32> to vector<32x32xbf16>
    %cst_18 = arith.constant dense<0.000000e+00> : vector<32x32xf32>
    %45 = tpu.matmul %40, %42, %cst_18 {dimension_numbers = #tpu.dot_dimension_numbers<[1], [1], [0], [0], [0, 0, 1, 0], [], []>} : vector<32x32xbf16>, vector<32x32xbf16>, vector<32x32xf32> -> vector<32x32xf32>
    %46 = arith.addf %45, %4 : vector<32x32xf32>
    %cst_19 = arith.constant dense<0xFF800000> : vector<32xf32>
    %47 = vector.multi_reduction <maximumf>, %46, %cst_19 [1] : vector<32x32xf32> to vector<32xf32>
    %48 = vector.shape_cast %47 : vector<32xf32> to vector<32x1xf32>
    %49 = vector.broadcast %48 : vector<32x1xf32> to vector<32x32xf32>
    %50 = arith.subf %46, %49 : vector<32x32xf32>
    %51 = math.exp %50 : vector<32x32xf32>
    %cst_20 = arith.constant dense<0.000000e+00> : vector<32xf32>
    %52 = vector.multi_reduction <add>, %51, %cst_20 [1] : vector<32x32xf32> to vector<32xf32>
    %53 = vector.shape_cast %52 : vector<32xf32> to vector<32x1xf32>
    %54 = tpu.reciprocal %53 {approx = true} : vector<32x1xf32> -> vector<32x1xf32>
    %55 = vector.broadcast %54 : vector<32x1xf32> to vector<32x32xf32>
    %56 = arith.mulf %51, %55 : vector<32x32xf32>
    %57 = arith.truncf %56 : vector<32x32xf32> to vector<32x32xbf16>
    %cst_21 = arith.constant dense<0.000000e+00> : vector<32x32xf32>
    %58 = tpu.matmul %57, %44, %cst_21 {dimension_numbers = #tpu.dot_dimension_numbers<[1], [0], [0], [1], [0, 0, 1, 1], [], []>} : vector<32x32xbf16>, vector<32x32xbf16>, vector<32x32xf32> -> vector<32x32xf32>
    %59 = vector.extract_strided_slice %38 {offsets = [0, 32], sizes = [32, 32], strides = [1, 1]} : vector<32x384xf32> to vector<32x32xf32>
    %60 = arith.truncf %59 : vector<32x32xf32> to vector<32x32xbf16>
    %61 = vector.extract_strided_slice %38 {offsets = [0, 160], sizes = [32, 32], strides = [1, 1]} : vector<32x384xf32> to vector<32x32xf32>
    %62 = arith.truncf %61 : vector<32x32xf32> to vector<32x32xbf16>
    %63 = vector.extract_strided_slice %38 {offsets = [0, 288], sizes = [32, 32], strides = [1, 1]} : vector<32x384xf32> to vector<32x32xf32>
    %64 = arith.truncf %63 : vector<32x32xf32> to vector<32x32xbf16>
    %cst_22 = arith.constant dense<0.000000e+00> : vector<32x32xf32>
    %65 = tpu.matmul %60, %62, %cst_22 {dimension_numbers = #tpu.dot_dimension_numbers<[1], [1], [0], [0], [0, 0, 1, 0], [], []>} : vector<32x32xbf16>, vector<32x32xbf16>, vector<32x32xf32> -> vector<32x32xf32>
    %66 = arith.addf %65, %4 : vector<32x32xf32>
    %cst_23 = arith.constant dense<0xFF800000> : vector<32xf32>
    %67 = vector.multi_reduction <maximumf>, %66, %cst_23 [1] : vector<32x32xf32> to vector<32xf32>
    %68 = vector.shape_cast %67 : vector<32xf32> to vector<32x1xf32>
    %69 = vector.broadcast %68 : vector<32x1xf32> to vector<32x32xf32>
    %70 = arith.subf %66, %69 : vector<32x32xf32>
    %71 = math.exp %70 : vector<32x32xf32>
    %cst_24 = arith.constant dense<0.000000e+00> : vector<32xf32>
    %72 = vector.multi_reduction <add>, %71, %cst_24 [1] : vector<32x32xf32> to vector<32xf32>
    %73 = vector.shape_cast %72 : vector<32xf32> to vector<32x1xf32>
    %74 = tpu.reciprocal %73 {approx = true} : vector<32x1xf32> -> vector<32x1xf32>
    %75 = vector.broadcast %74 : vector<32x1xf32> to vector<32x32xf32>
    %76 = arith.mulf %71, %75 : vector<32x32xf32>
    %77 = arith.truncf %76 : vector<32x32xf32> to vector<32x32xbf16>
    %cst_25 = arith.constant dense<0.000000e+00> : vector<32x32xf32>
    %78 = tpu.matmul %77, %64, %cst_25 {dimension_numbers = #tpu.dot_dimension_numbers<[1], [0], [0], [1], [0, 0, 1, 1], [], []>} : vector<32x32xbf16>, vector<32x32xbf16>, vector<32x32xf32> -> vector<32x32xf32>
    %79 = vector.extract_strided_slice %38 {offsets = [0, 64], sizes = [32, 32], strides = [1, 1]} : vector<32x384xf32> to vector<32x32xf32>
    %80 = arith.truncf %79 : vector<32x32xf32> to vector<32x32xbf16>
    %81 = vector.extract_strided_slice %38 {offsets = [0, 192], sizes = [32, 32], strides = [1, 1]} : vector<32x384xf32> to vector<32x32xf32>
    %82 = arith.truncf %81 : vector<32x32xf32> to vector<32x32xbf16>
    %83 = vector.extract_strided_slice %38 {offsets = [0, 320], sizes = [32, 32], strides = [1, 1]} : vector<32x384xf32> to vector<32x32xf32>
    %84 = arith.truncf %83 : vector<32x32xf32> to vector<32x32xbf16>
    %cst_26 = arith.constant dense<0.000000e+00> : vector<32x32xf32>
    %85 = tpu.matmul %80, %82, %cst_26 {dimension_numbers = #tpu.dot_dimension_numbers<[1], [1], [0], [0], [0, 0, 1, 0], [], []>} : vector<32x32xbf16>, vector<32x32xbf16>, vector<32x32xf32> -> vector<32x32xf32>
    %86 = arith.addf %85, %4 : vector<32x32xf32>
    %cst_27 = arith.constant dense<0xFF800000> : vector<32xf32>
    %87 = vector.multi_reduction <maximumf>, %86, %cst_27 [1] : vector<32x32xf32> to vector<32xf32>
    %88 = vector.shape_cast %87 : vector<32xf32> to vector<32x1xf32>
    %89 = vector.broadcast %88 : vector<32x1xf32> to vector<32x32xf32>
    %90 = arith.subf %86, %89 : vector<32x32xf32>
    %91 = math.exp %90 : vector<32x32xf32>
    %cst_28 = arith.constant dense<0.000000e+00> : vector<32xf32>
    %92 = vector.multi_reduction <add>, %91, %cst_28 [1] : vector<32x32xf32> to vector<32xf32>
    %93 = vector.shape_cast %92 : vector<32xf32> to vector<32x1xf32>
    %94 = tpu.reciprocal %93 {approx = true} : vector<32x1xf32> -> vector<32x1xf32>
    %95 = vector.broadcast %94 : vector<32x1xf32> to vector<32x32xf32>
    %96 = arith.mulf %91, %95 : vector<32x32xf32>
    %97 = arith.truncf %96 : vector<32x32xf32> to vector<32x32xbf16>
    %cst_29 = arith.constant dense<0.000000e+00> : vector<32x32xf32>
    %98 = tpu.matmul %97, %84, %cst_29 {dimension_numbers = #tpu.dot_dimension_numbers<[1], [0], [0], [1], [0, 0, 1, 1], [], []>} : vector<32x32xbf16>, vector<32x32xbf16>, vector<32x32xf32> -> vector<32x32xf32>
    %99 = vector.extract_strided_slice %38 {offsets = [0, 96], sizes = [32, 32], strides = [1, 1]} : vector<32x384xf32> to vector<32x32xf32>
    %100 = arith.truncf %99 : vector<32x32xf32> to vector<32x32xbf16>
    %101 = vector.extract_strided_slice %38 {offsets = [0, 224], sizes = [32, 32], strides = [1, 1]} : vector<32x384xf32> to vector<32x32xf32>
    %102 = arith.truncf %101 : vector<32x32xf32> to vector<32x32xbf16>
    %103 = vector.extract_strided_slice %38 {offsets = [0, 352], sizes = [32, 32], strides = [1, 1]} : vector<32x384xf32> to vector<32x32xf32>
    %104 = arith.truncf %103 : vector<32x32xf32> to vector<32x32xbf16>
    %cst_30 = arith.constant dense<0.000000e+00> : vector<32x32xf32>
    %105 = tpu.matmul %100, %102, %cst_30 {dimension_numbers = #tpu.dot_dimension_numbers<[1], [1], [0], [0], [0, 0, 1, 0], [], []>} : vector<32x32xbf16>, vector<32x32xbf16>, vector<32x32xf32> -> vector<32x32xf32>
    %106 = arith.addf %105, %4 : vector<32x32xf32>
    %cst_31 = arith.constant dense<0xFF800000> : vector<32xf32>
    %107 = vector.multi_reduction <maximumf>, %106, %cst_31 [1] : vector<32x32xf32> to vector<32xf32>
    %108 = vector.shape_cast %107 : vector<32xf32> to vector<32x1xf32>
    %109 = vector.broadcast %108 : vector<32x1xf32> to vector<32x32xf32>
    %110 = arith.subf %106, %109 : vector<32x32xf32>
    %111 = math.exp %110 : vector<32x32xf32>
    %cst_32 = arith.constant dense<0.000000e+00> : vector<32xf32>
    %112 = vector.multi_reduction <add>, %111, %cst_32 [1] : vector<32x32xf32> to vector<32xf32>
    %113 = vector.shape_cast %112 : vector<32xf32> to vector<32x1xf32>
    %114 = tpu.reciprocal %113 {approx = true} : vector<32x1xf32> -> vector<32x1xf32>
    %115 = vector.broadcast %114 : vector<32x1xf32> to vector<32x32xf32>
    %116 = arith.mulf %111, %115 : vector<32x32xf32>
    %117 = arith.truncf %116 : vector<32x32xf32> to vector<32x32xbf16>
    %cst_33 = arith.constant dense<0.000000e+00> : vector<32x32xf32>
    %118 = tpu.matmul %117, %104, %cst_33 {dimension_numbers = #tpu.dot_dimension_numbers<[1], [0], [0], [1], [0, 0, 1, 1], [], []>} : vector<32x32xbf16>, vector<32x32xbf16>, vector<32x32xf32> -> vector<32x32xf32>
    %119 = tpu.concatenate %58, %78, %98, %118 in 1 : vector<32x32xf32>, vector<32x32xf32>, vector<32x32xf32>, vector<32x32xf32> -> vector<32x128xf32>
    %120 = arith.truncf %119 : vector<32x128xf32> to vector<32x128xbf16>
    %c0_34 = arith.constant 0 : index
    %c0_35 = arith.constant 0 : index
    %c0_36 = arith.constant 0 : index
    %121 = vector.load %arg7[%c0_34, %c0_35, %c0_36] : memref<1x128x128xbf16, #tpu.memory_space<vmem>>, vector<1x128x128xbf16>
    %122 = vector.shape_cast %121 : vector<1x128x128xbf16> to vector<128x128xbf16>
    %cst_37 = arith.constant dense<0.000000e+00> : vector<32x128xf32>
    %123 = tpu.matmul %120, %122, %cst_37 {dimension_numbers = #tpu.dot_dimension_numbers<[1], [0], [0], [1], [0, 0, 1, 1], [], []>} : vector<32x128xbf16>, vector<128x128xbf16>, vector<32x128xf32> -> vector<32x128xf32>
    %124 = vector.extract_strided_slice %6 {offsets = [4, 0], sizes = [1, 128], strides = [1, 1]} : vector<6x128xf32> to vector<1x128xf32>
    %125 = vector.broadcast %124 : vector<1x128xf32> to vector<32x128xf32>
    %126 = arith.addf %123, %125 : vector<32x128xf32>
    %127 = arith.addf %3, %126 : vector<32x128xf32>
    %128 = vector.extract_strided_slice %6 {offsets = [2, 0], sizes = [1, 128], strides = [1, 1]} : vector<6x128xf32> to vector<1x128xf32>
    %129 = vector.extract_strided_slice %6 {offsets = [3, 0], sizes = [1, 128], strides = [1, 1]} : vector<6x128xf32> to vector<1x128xf32>
    %cst_38 = arith.constant dense<0.000000e+00> : vector<32xf32>
    %130 = vector.multi_reduction <add>, %127, %cst_38 [1] : vector<32x128xf32> to vector<32xf32>
    %131 = vector.shape_cast %130 : vector<32xf32> to vector<32x1xf32>
    %cst_39 = arith.constant 1.280000e+02 : f32
    %132 = vector.broadcast %cst_39 : f32 to vector<32x1xf32>
    %133 = arith.divf %131, %132 : vector<32x1xf32>
    %134 = vector.broadcast %133 : vector<32x1xf32> to vector<32x128xf32>
    %135 = arith.subf %127, %134 : vector<32x128xf32>
    %136 = arith.mulf %135, %135 : vector<32x128xf32>
    %cst_40 = arith.constant dense<0.000000e+00> : vector<32xf32>
    %137 = vector.multi_reduction <add>, %136, %cst_40 [1] : vector<32x128xf32> to vector<32xf32>
    %138 = vector.shape_cast %137 : vector<32xf32> to vector<32x1xf32>
    %cst_41 = arith.constant 1.280000e+02 : f32
    %139 = vector.broadcast %cst_41 : f32 to vector<32x1xf32>
    %140 = arith.divf %138, %139 : vector<32x1xf32>
    %141 = vector.broadcast %133 : vector<32x1xf32> to vector<32x128xf32>
    %142 = arith.subf %127, %141 : vector<32x128xf32>
    %cst_42 = arith.constant 9.99999974E-6 : f32
    %143 = vector.broadcast %cst_42 : f32 to vector<32x1xf32>
    %144 = arith.addf %140, %143 : vector<32x1xf32>
    %145 = math.rsqrt %144 : vector<32x1xf32>
    %146 = vector.broadcast %145 : vector<32x1xf32> to vector<32x128xf32>
    %147 = arith.mulf %142, %146 : vector<32x128xf32>
    %148 = vector.broadcast %128 : vector<1x128xf32> to vector<32x128xf32>
    %149 = arith.mulf %147, %148 : vector<32x128xf32>
    %150 = vector.broadcast %129 : vector<1x128xf32> to vector<32x128xf32>
    %151 = arith.addf %149, %150 : vector<32x128xf32>
    %152 = arith.truncf %151 : vector<32x128xf32> to vector<32x128xbf16>
    %c0_43 = arith.constant 0 : index
    %c0_44 = arith.constant 0 : index
    %c0_45 = arith.constant 0 : index
    %153 = vector.load %arg8[%c0_43, %c0_44, %c0_45] : memref<1x128x512xbf16, #tpu.memory_space<vmem>>, vector<1x128x512xbf16>
    %154 = vector.shape_cast %153 : vector<1x128x512xbf16> to vector<128x512xbf16>
    %cst_46 = arith.constant dense<0.000000e+00> : vector<32x512xf32>
    %155 = tpu.matmul %152, %154, %cst_46 {dimension_numbers = #tpu.dot_dimension_numbers<[1], [0], [0], [1], [0, 0, 1, 1], [], []>} : vector<32x128xbf16>, vector<128x512xbf16>, vector<32x512xf32> -> vector<32x512xf32>
    %c0_47 = arith.constant 0 : index
    %c0_48 = arith.constant 0 : index
    %c0_49 = arith.constant 0 : index
    %156 = vector.load %arg12[%c0_47, %c0_48, %c0_49] : memref<1x1x512xf32, #tpu.memory_space<vmem>>, vector<1x1x512xf32>
    %157 = vector.shape_cast %156 : vector<1x1x512xf32> to vector<1x512xf32>
    %158 = vector.broadcast %157 : vector<1x512xf32> to vector<32x512xf32>
    %159 = arith.addf %155, %158 : vector<32x512xf32>
    %cst_50 = arith.constant 1.702000e+00 : f32
    %160 = vector.broadcast %cst_50 : f32 to vector<32x512xf32>
    %161 = arith.mulf %160, %159 : vector<32x512xf32>
    %162 = arith.negf %161 : vector<32x512xf32>
    %163 = math.exp %162 : vector<32x512xf32>
    %cst_51 = arith.constant 1.000000e+00 : f32
    %164 = vector.broadcast %cst_51 : f32 to vector<32x512xf32>
    %165 = arith.addf %164, %163 : vector<32x512xf32>
    %166 = arith.divf %164, %165 : vector<32x512xf32>
    %167 = arith.mulf %159, %166 : vector<32x512xf32>
    %168 = arith.truncf %167 : vector<32x512xf32> to vector<32x512xbf16>
    %c0_52 = arith.constant 0 : index
    %c0_53 = arith.constant 0 : index
    %c0_54 = arith.constant 0 : index
    %169 = vector.load %arg9[%c0_52, %c0_53, %c0_54] : memref<1x512x128xbf16, #tpu.memory_space<vmem>>, vector<1x512x128xbf16>
    %170 = vector.shape_cast %169 : vector<1x512x128xbf16> to vector<512x128xbf16>
    %cst_55 = arith.constant dense<0.000000e+00> : vector<32x128xf32>
    %171 = tpu.matmul %168, %170, %cst_55 {dimension_numbers = #tpu.dot_dimension_numbers<[1], [0], [0], [1], [0, 0, 1, 1], [], []>} : vector<32x512xbf16>, vector<512x128xbf16>, vector<32x128xf32> -> vector<32x128xf32>
    %172 = vector.extract_strided_slice %6 {offsets = [5, 0], sizes = [1, 128], strides = [1, 1]} : vector<6x128xf32> to vector<1x128xf32>
    %173 = vector.broadcast %172 : vector<1x128xf32> to vector<32x128xf32>
    %174 = arith.addf %171, %173 : vector<32x128xf32>
    %175 = arith.addf %127, %174 : vector<32x128xf32>
    %c0_56 = arith.constant 0 : index
    %c0_57 = arith.constant 0 : index
    %176 = vector.load %arg14[%c0_56, %c0_57] : memref<32x128xf32, #tpu.memory_space<vmem>>, vector<32x128xf32>
    tpu.vector_store %arg14[%c0_56, %c0_57], %175 {strides = array<i32>} : memref<32x128xf32, #tpu.memory_space<vmem>>, vector<32x128xf32>,
    %c3_i32 = arith.constant 3 : i32
    %177 = arith.cmpi eq, %arg0, %c3_i32 : i32
    %178 = arith.extui %177 : i1 to i32
    %c0_i32_58 = arith.constant 0 : i32
    %179 = arith.cmpi ne, %178, %c0_i32_58 : i32
    scf.if %179 {
      %c0_59 = arith.constant 0 : index
      %c0_60 = arith.constant 0 : index
      %180 = vector.load %arg5[%c0_59, %c0_60] : memref<2x128xf32, #tpu.memory_space<vmem>>, vector<2x128xf32>
      %c0_61 = arith.constant 0 : index
      %c0_62 = arith.constant 0 : index
      %181 = vector.load %arg14[%c0_61, %c0_62] : memref<32x128xf32, #tpu.memory_space<vmem>>, vector<32x128xf32>
      %182 = vector.extract_strided_slice %180 {offsets = [0, 0], sizes = [1, 128], strides = [1, 1]} : vector<2x128xf32> to vector<1x128xf32>
      %183 = vector.extract_strided_slice %180 {offsets = [1, 0], sizes = [1, 128], strides = [1, 1]} : vector<2x128xf32> to vector<1x128xf32>
      %cst_63 = arith.constant dense<0.000000e+00> : vector<32xf32>
      %184 = vector.multi_reduction <add>, %181, %cst_63 [1] : vector<32x128xf32> to vector<32xf32>
      %185 = vector.shape_cast %184 : vector<32xf32> to vector<32x1xf32>
      %cst_64 = arith.constant 1.280000e+02 : f32
      %186 = vector.broadcast %cst_64 : f32 to vector<32x1xf32>
      %187 = arith.divf %185, %186 : vector<32x1xf32>
      %188 = vector.broadcast %187 : vector<32x1xf32> to vector<32x128xf32>
      %189 = arith.subf %181, %188 : vector<32x128xf32>
      %190 = arith.mulf %189, %189 : vector<32x128xf32>
      %cst_65 = arith.constant dense<0.000000e+00> : vector<32xf32>
      %191 = vector.multi_reduction <add>, %190, %cst_65 [1] : vector<32x128xf32> to vector<32xf32>
      %192 = vector.shape_cast %191 : vector<32xf32> to vector<32x1xf32>
      %cst_66 = arith.constant 1.280000e+02 : f32
      %193 = vector.broadcast %cst_66 : f32 to vector<32x1xf32>
      %194 = arith.divf %192, %193 : vector<32x1xf32>
      %195 = vector.broadcast %187 : vector<32x1xf32> to vector<32x128xf32>
      %196 = arith.subf %181, %195 : vector<32x128xf32>
      %cst_67 = arith.constant 9.99999974E-6 : f32
      %197 = vector.broadcast %cst_67 : f32 to vector<32x1xf32>
      %198 = arith.addf %194, %197 : vector<32x1xf32>
      %199 = math.rsqrt %198 : vector<32x1xf32>
      %200 = vector.broadcast %199 : vector<32x1xf32> to vector<32x128xf32>
      %201 = arith.mulf %196, %200 : vector<32x128xf32>
      %202 = vector.broadcast %182 : vector<1x128xf32> to vector<32x128xf32>
      %203 = arith.mulf %201, %202 : vector<32x128xf32>
      %204 = vector.broadcast %183 : vector<1x128xf32> to vector<32x128xf32>
      %205 = arith.addf %203, %204 : vector<32x128xf32>
      %c0_68 = arith.constant 0 : index
      %c0_69 = arith.constant 0 : index
      %206 = vector.load %arg13[%c0_68, %c0_69] : memref<32x128xf32, #tpu.memory_space<vmem>>, vector<32x128xf32>
      tpu.vector_store %arg13[%c0_68, %c0_69], %205 {strides = array<i32>} : memref<32x128xf32, #tpu.memory_space<vmem>>, vector<32x128xf32>,
    } else {
    }
    return
  }
  func.func @transform_1(%arg0: i32, %arg1: memref<32xi32, #tpu.memory_space<smem>>) -> (i32, i32) {
    %c0_i32 = arith.constant 0 : i32
    %c0_i32_0 = arith.constant 0 : i32
    %c0_i32_1 = arith.constant 0 : i32
    return %c0_i32, %c0_i32_0 : i32, i32
  }
  func.func @transform_2(%arg0: i32, %arg1: memref<32xi32, #tpu.memory_space<smem>>) -> (i32, i32) {
    %c0_i32 = arith.constant 0 : i32
    %c0_i32_0 = arith.constant 0 : i32
    %c0_i32_1 = arith.constant 0 : i32
    return %c0_i32, %c0_i32_0 : i32, i32
  }
  func.func @transform_3(%arg0: i32, %arg1: memref<32xi32, #tpu.memory_space<smem>>) -> (i32, i32) {
    %c0_i32 = arith.constant 0 : i32
    %c0_i32_0 = arith.constant 0 : i32
    %c0_i32_1 = arith.constant 0 : i32
    return %c0_i32, %c0_i32_0 : i32, i32
  }
  func.func @transform_4(%arg0: i32, %arg1: memref<32xi32, #tpu.memory_space<smem>>) -> (i32, i32, i32) {
    %c0_i32 = arith.constant 0 : i32
    %c0_i32_0 = arith.constant 0 : i32
    %c0_i32_1 = arith.constant 0 : i32
    return %arg0, %c0_i32, %c0_i32_0 : i32, i32, i32
  }
  func.func @transform_5(%arg0: i32, %arg1: memref<32xi32, #tpu.memory_space<smem>>) -> (i32, i32, i32) {
    %c0_i32 = arith.constant 0 : i32
    %c0_i32_0 = arith.constant 0 : i32
    %c0_i32_1 = arith.constant 0 : i32
    return %arg0, %c0_i32, %c0_i32_0 : i32, i32, i32
  }
  func.func @transform_6(%arg0: i32, %arg1: memref<32xi32, #tpu.memory_space<smem>>) -> (i32, i32, i32) {
    %c0_i32 = arith.constant 0 : i32
    %c0_i32_0 = arith.constant 0 : i32
    %c0_i32_1 = arith.constant 0 : i32
    return %arg0, %c0_i32, %c0_i32_0 : i32, i32, i32
  }
  func.func @transform_7(%arg0: i32, %arg1: memref<32xi32, #tpu.memory_space<smem>>) -> (i32, i32, i32) {
    %c0_i32 = arith.constant 0 : i32
    %c0_i32_0 = arith.constant 0 : i32
    %c0_i32_1 = arith.constant 0 : i32
    return %arg0, %c0_i32, %c0_i32_0 : i32, i32, i32
  }
  func.func @transform_8(%arg0: i32, %arg1: memref<32xi32, #tpu.memory_space<smem>>) -> (i32, i32, i32) {
    %c0_i32 = arith.constant 0 : i32
    %c0_i32_0 = arith.constant 0 : i32
    %c0_i32_1 = arith.constant 0 : i32
    return %arg0, %c0_i32, %c0_i32_0 : i32, i32, i32
  }
  func.func @transform_9(%arg0: i32, %arg1: memref<32xi32, #tpu.memory_space<smem>>) -> (i32, i32, i32) {
    %c0_i32 = arith.constant 0 : i32
    %c0_i32_0 = arith.constant 0 : i32
    %c0_i32_1 = arith.constant 0 : i32
    return %arg0, %c0_i32, %c0_i32_0 : i32, i32, i32
  }
  func.func @transform_10(%arg0: i32, %arg1: memref<32xi32, #tpu.memory_space<smem>>) -> (i32, i32, i32) {
    %c0_i32 = arith.constant 0 : i32
    %c0_i32_0 = arith.constant 0 : i32
    %c0_i32_1 = arith.constant 0 : i32
    return %arg0, %c0_i32, %c0_i32_0 : i32, i32, i32
  }
  func.func @transform_11(%arg0: i32, %arg1: memref<32xi32, #tpu.memory_space<smem>>) -> (i32, i32) {
    %c0_i32 = arith.constant 0 : i32
    %c0_i32_0 = arith.constant 0 : i32
    %c0_i32_1 = arith.constant 0 : i32
    return %c0_i32, %c0_i32_0 : i32, i32
  }
}

</mosaic_0001>

<bundles_post_ra>
// kernel: clip_forward.1
= control target key start
LH: loop header
LB: loop body
LE: loop exit
PB: predicated region body
PF: predicated region fallthrough
CT: control target
= control target key end

     0   :  { %s4879_s0 = inlined_call_operand.vmem [shape: s32[32], index: 0, kind: input, shape index: {}]   ;;  %s4880_s1 = inlined_call_operand.hbm [shape: f32[512,128], index: 1, kind: input, shape index: {}]   ;;  %s4881_s2 = inlined_call_operand.vmem [shape: f32[32,128], index: 2, kind: input, shape index: {}]   ;;  %s4882_s3 = inlined_call_operand.vmem [shape: f32[32,32], index: 3, kind: input, shape index: {}]   ;;  %s4883_s4 = inlined_call_operand.vmem [shape: f32[2,128], index: 4, kind: input, shape index: {}]   ;;  %s4884_s5 = inlined_call_operand.hbm [shape: bf16[4,128,384], index: 5, kind: input, shape index: {}]   ;;  %s4885_s6 = inlined_call_operand.hbm [shape: bf16[4,128,128], index: 6, kind: input, shape index: {}]   ;;  %s4886_s7 = inlined_call_operand.hbm [shape: bf16[4,128,512], index: 7, kind: input, shape index: {}]   ;;  %s4887_s8 = inlined_call_operand.hbm [shape: bf16[4,512,128], index: 8, kind: input, shape index: {}]   ;;  %s4888_s9 = inlined_call_operand.vmem [shape: f32[4,6,128], index: 9, kind: input, shape index: {}]   ;;  %s4889_s10 = inlined_call_operand.vmem [shape: f32[4,1,384], index: 10, kind: input, shape index: {}]   ;;  %s4890_s11 = inlined_call_operand.vmem [shape: f32[4,1,512], index: 11, kind: input, shape index: {}]   ;;  %s4891_s12 = inlined_call_operand.hbm [shape: f32[32,128], index: 12, kind: output, shape index: {}]  }
   0x1   :  { %4899 = sst [smem:[#allocation28_spill]] %s4884_s5  ;;  %s17_s23 = sshll.u32 %s4879_s0, 4  ;;  %s18_s23 = int_to_ptr.vmem [resolvable:$true] %s17_s23 }
   0x2   :  { %4900 = sst [smem:[#allocation29_spill]] %s4885_s6  ;;  %s3722_s24 = scalar_lea.vmem %s18_s23, 16 }
   0x3   :  { %4901 = sst [smem:[#allocation30_spill]] %s4886_s7  ;;  %p3723_p0 = scmp.ne.s32.totalorder %s18_s23, %s3722_s24 }
   0x4   :  { %4902 = sst [smem:[#allocation31_spill]] %s4891_s12  ;;  %p3727_p1 = scmp.lt.s32.totalorder %s18_s23, %s18_s23 }
   0x5   :  { %p3728_p2 = scmp.lt.s32.totalorder %s3722_s24, %s3722_s24 }
   0x7   :  { %p3729_p3 = por %p3728_p2, %p3727_p1 }
   0x9   :  { %p3730_p4 = pnand %p3729_p3, %p3723_p0 }
   0xb   :  { %3733 = shalt.err (!%p3730_p4)  }
   0xc   :  { %s3964_s25 = smov [#allocation4]  }
   0xd   :  { %20 = dma.vmem_to_smem %s18_s23, 16, %s3964_s25, [#allocation3] }
   0xe   :  { %3924 = dma.done.wait [#allocation3], 16 }
   0xf   :  { %3925 = vsyncadd [#allocation3], 4294967280 }
  0x10   :  { %22 = sfence }
  0x11   :  { %23 = vsyncpa [#allocation6], 0 }
  0x12   :  { %25 = vsyncpa [#allocation6 + $0x1], 0 }
  0x13   :  { %26 = vsyncpa [#allocation9], 0 }
  0x14   :  { %28 = vsyncpa [#allocation9 + $0x1], 0 }
  0x15   :  { %29 = vsyncpa [#allocation12], 0 }
  0x16   :  { %31 = vsyncpa [#allocation12 + $0x1], 0 }
  0x17   :  { %32 = vsyncpa [#allocation7], 0  ;;  %s4051_s0 = smov 0   ;;  %s4053_s26 = smov 0  }
  0x18   :  { %s4055_s27 = smov 0   ;;  %s4057_s28 = smov 0  }
  0x19 LB: > { %4903 = sst [smem:[#allocation25_spill]] %s3954_s27  ;;  %s4070_s29 = sadd.s32 4294967295, %s3958_s28   ;;  %s3958_s28 = sphi %s4057_s28, %s4918_s28   ;;  %s3954_s27 = sphi %s4055_s27, %s4920_s27   ;;  %s3950_s26 = sphi %s4053_s26, %s4922_s26   ;;  %s3946_s0 = sphi %s4051_s0, %s4921_s0  }
  0x1a   : > { %s4073_s30 = sadd.s32 1, %s3958_s28   ;;  %s108_s14 = sadd.s32 1, %s3954_s27 }
  0x1b   : > { %4904 = sst [smem:[#allocation26_spill]] %s4073_s30  ;;  %s105_s13 = ssub.s32 %s3958_s28, %s4073_s30 }
  0x1c   : > { %p106_p5 = scmp.eq.s32.totalorder %s105_s13, 0  ;;  %p115_p6 = scmp.ne.s32.totalorder %s3954_s27, %s3950_s26 }
  0x1d   : > { %p116_p7 = scmp.eq.s32.totalorder %s3958_s28, 0  ;;  %p121_p8 = scmp.ne.s32.totalorder %s3950_s26, %s3946_s0 }
  0x1e   : > { %s4083_s15 = scalar_select %p106_p5, %s3954_s27, %s108_s14  }
  0x1f   : > { %p117_p9 = por %p116_p7, %p115_p6  ;;  %p122_p10 = scmp.eq.s32.totalorder %s4070_s29, 0 }
  0x20   : > { %4905 = sst [smem:[#allocation27_spill]] %s4083_s15  ;;  %p3358_p11 = scmp.lt.s32.totalorder %s3958_s28, 4 }
  0x21   : > { %p4087_p12 = por %p122_p10, %p121_p8  ;;  %s4092_s17 = sand.u32 1, %s3954_s27  }
  0x22   : > { %p4094_p13 = pnand %p3358_p11, %p117_p9  ;;  %s352_s19 = sand.u32 1, %s3958_s28  }
  0x23   : > { %s4906_s16 = scalar_select %p4087_p12, 1, 0 }
  0x24   : > { %s2956_s20 = sshll.u32 %s4092_s17, 6  ;;  %s3106_s21 = sshll.u32 %s3958_s28, 10 }
  0x25   : > { %s356_s22 = scalar_lea.vmem [#allocation8], %s2956_s20  ;;  %s4908_s6 = sld [smem:[#allocation29_spill]] }
  0x26   : > { %s363_s23 = sshll.u32 %s356_s22, 4  ;;  %s4108_s13 = scalar_lea.sflag [#allocation9], %s352_s19  ;;  %s4106_s23 = int_to_ptr.vmem [resolvable:$true] %s363_s23 }
  0x27   : > { %p4114_p1 = pneg %p4094_p13 }
  0x2b   : > { %s4104_s0 = scalar_lea.hbm %s4908_s6, %s3106_s21  ;;  %s3739_s22 = scalar_lea.hbm %s4908_s6, 4096 }
  0x2c   : > { %s3734_s14 = scalar_lea.hbm %s4104_s0, 1024  ;;  %p3740_p4 = scmp.lt.u32.totalorder %s4104_s0, %s4908_s6 }
  0x2d   : > { %p3735_p0 = scmp.ne.s32.totalorder %s4104_s0, %s3734_s14  ;;  %p3741_p5 = scmp.lt.u32.totalorder %s3739_s22, %s3734_s14 }
  0x2e   : > { %p3743_p7 = scmp.lt.u32.totalorder %s3734_s14, %s4104_s0 }
  0x2f   : > { %p3737_p2 = pnand %p4114_p1, %p3735_p0  ;;  %p3742_p6 = por %p3741_p5, %p3740_p4 }
  0x31   : > { %p3738_p3 = pneg %p3737_p2  ;;  %p3744_p8 = por %p3743_p7, %p3742_p6 }
  0x33   : > { %p3745_p9 = pnand %p3744_p8, %p3738_p3 }
  0x35   : > { %3748 = shalt.err (!%p3745_p9)
}
  0x36   : > { %s3749_s19 = scalar_lea.vmem %s4106_s23, 1024  ;;  %s3965_s20 = smov [#allocation8]  }
  0x37   : > { %p3750_p10 = scmp.ne.s32.totalorder %s4106_s23, %s3749_s19  ;;  %s3754_s21 = sshll.u32 %s3965_s20, 4  ;;  %s3755_s21 = int_to_ptr.vmem [resolvable:$false] %s3754_s21 }
  0x38   : > { %s3756_s24 = scalar_lea.vmem %s3755_s21, 2048  ;;  %p3757_p2 = scmp.lt.s32.totalorder %s4106_s23, %s3755_s21 }
  0x39   : > { %p3752_p11 = pnand %p3750_p10, %p4114_p1  ;;  %p3758_p12 = scmp.lt.s32.totalorder %s3756_s24, %s3749_s19 }
  0x3b   : > { %p3753_p0 = pneg %p3752_p11  ;;  %p3759_p4 = por %p3758_p12, %p3757_p2 }
  0x3d   : > { %p3760_p5 = pnand %p3759_p4, %p3753_p0 }
  0x3f   : > { %3763 = shalt.err (!%p3760_p5)
}
  0x40   : > { %s4896_s14 = smov 64   ;;  %s4897_s22 = smov 4  }
  0x41   : > { %3351 = dma.hbm_to_vmem [thread:$0]  (!%p4094_p13), %s4104_s0, 1024, %s4106_s23, %s4108_s13, %s4896_s14, %s4896_s14, %s4897_s22  }
  0x42   : > { %p2965_p12 = scmp.ge.s32.totalorder %s3958_s28, 1  ;;  %p434_p3 = scmp.lt.s32.totalorder %s3958_s28, 5 }
  0x43   : > { %s3329_s25 = smul.u32 192, %s4092_s17  ;;  %s4911_s5 = sld [smem:[#allocation28_spill]] }
  0x44   : > { %p4144_p6 = pnand %p2965_p12, %p434_p3  ;;  %s3330_s20 = smul.u32 3072, %s3958_s28 }
  0x45   : > { %s335_s27 = scalar_lea.vmem [#allocation5], %s3329_s25  ;;  %s332_s23 = scalar_lea.sflag [#allocation6], %s4092_s17 }
  0x46   : > { %s4910_s19 = scalar_select %p4144_p6, 1, 0 }
  0x47   : > { %s342_s30 = sshll.u32 %s335_s27, 4  ;;  %s4154_s30 = int_to_ptr.vmem [resolvable:$true] %s342_s30 }
  0x49   : > { %s4152_s6 = scalar_lea.hbm %s4911_s5, %s3330_s20  ;;  %s3769_s21 = scalar_lea.hbm %s4911_s5, 12288 }
  0x4a   : > { %s3764_s0 = scalar_lea.hbm %s4152_s6, 3072  ;;  %p3770_p10 = scmp.lt.u32.totalorder %s4152_s6, %s4911_s5 }
  0x4b   : > { %p3765_p7 = scmp.ne.s32.totalorder %s4152_s6, %s3764_s0  ;;  %p3771_p11 = scmp.lt.u32.totalorder %s3769_s21, %s3764_s0 }
  0x4c   : > { %p3773_p2 = scmp.lt.u32.totalorder %s3764_s0, %s4152_s6 }
  0x4d   : > { %p3767_p8 = pnand %p3765_p7, %p4114_p1  ;;  %p3772_p0 = por %p3771_p11, %p3770_p10 }
  0x4f   : > { %p3768_p9 = pneg %p3767_p8  ;;  %p3774_p4 = por %p3773_p2, %p3772_p0 }
  0x51   : > { %p3775_p5 = pnand %p3774_p4, %p3768_p9 }
  0x53   : > { %3778 = shalt.err (!%p3775_p5)
}
  0x54   : > { %s3779_s27 = scalar_lea.vmem %s4154_s30, 3072  ;;  %s3968_s14 = smov [#allocation5]  }
  0x55   : > { %p3780_p12 = scmp.ne.s32.totalorder %s4154_s30, %s3779_s27  ;;  %s3784_s22 = sshll.u32 %s3968_s14, 4  ;;  %s3785_s22 = int_to_ptr.vmem [resolvable:$false] %s3784_s22 }
  0x56   : > { %s3786_s25 = scalar_lea.vmem %s3785_s22, 6144  ;;  %p3787_p8 = scmp.lt.s32.totalorder %s4154_s30, %s3785_s22 }
  0x57   : > { %p3782_p3 = pnand %p3780_p12, %p4114_p1  ;;  %p3788_p6 = scmp.lt.s32.totalorder %s3786_s25, %s3779_s27 }
  0x59   : > { %p3783_p7 = pneg %p3782_p3  ;;  %p3789_p10 = por %p3788_p6, %p3787_p8 }
  0x5b   : > { %p3790_p11 = pnand %p3789_p10, %p3783_p7 }
  0x5d   : > { %3793 = shalt.err (!%p3790_p11)
}
  0x5e   : > { %s3969_s0 = smov 192   ;;  %s3970_s21 = smov 12  }
  0x5f   : > { %3348 = dma.hbm_to_vmem [thread:$0]  (!%p4094_p13), %s4152_s6, 3072, %s4154_s30, %s332_s23, %s3969_s0, %s3969_s0, %s3970_s21  }
  0x60   : > { %s2959_s20 = sshll.u32 %s4092_s17, 8  ;;  %s3107_s24 = sshll.u32 %s3958_s28, 12 }
  0x61   : > { %s4912_s7 = sld [smem:[#allocation30_spill]]  ;;  %s377_s25 = scalar_lea.vmem [#allocation10], %s2959_s20 }
  0x62   : > { %s384_s5 = sshll.u32 %s377_s25, 4  ;;  %s4191_s5 = int_to_ptr.vmem [resolvable:$true] %s384_s5 }
  0x67   : > { %s4187_s22 = scalar_lea.hbm %s4912_s7, %s3107_s24  ;;  %s3799_s23 = scalar_lea.hbm %s4912_s7, 16384 }
  0x68   : > { %s3794_s12 = scalar_lea.hbm %s4187_s22, 4096  ;;  %p3800_p2 = scmp.lt.u32.totalorder %s4187_s22, %s4912_s7 }
  0x69   : > { %p3795_p6 = scmp.ne.s32.totalorder %s4187_s22, %s3794_s12  ;;  %p3801_p4 = scmp.lt.u32.totalorder %s3799_s23, %s3794_s12 }
  0x6a   : > { %p3803_p12 = scmp.lt.u32.totalorder %s3794_s12, %s4187_s22 }
  0x6b   : > { %p3797_p9 = pnand %p3795_p6, %p4114_p1  ;;  %p3802_p5 = por %p3801_p4, %p3800_p2 }
  0x6d   : > { %p3798_p0 = pneg %p3797_p9  ;;  %p3804_p3 = por %p3803_p12, %p3802_p5 }
  0x6f   : > { %p3805_p7 = pnand %p3804_p3, %p3798_p0 }
  0x71   : > { %3808 = shalt.err (!%p3805_p7)
}
  0x72   : > { %s3809_s27 = scalar_lea.vmem %s4191_s5, 4096  ;;  %s3971_s14 = smov [#allocation10]  }
  0x73   : > { %p3810_p8 = scmp.ne.s32.totalorder %s4191_s5, %s3809_s27  ;;  %s3814_s25 = sshll.u32 %s3971_s14, 4  ;;  %s3815_s25 = int_to_ptr.vmem [resolvable:$false] %s3814_s25 }
  0x74   : > { %s3816_s6 = scalar_lea.vmem %s3815_s25, 8192  ;;  %p3817_p6 = scmp.lt.s32.totalorder %s4191_s5, %s3815_s25 }
  0x75   : > { %p3812_p10 = pnand %p3810_p8, %p4114_p1  ;;  %p3818_p9 = scmp.lt.s32.totalorder %s3816_s6, %s3809_s27 }
  0x77   : > { %p3813_p11 = pneg %p3812_p10  ;;  %p3819_p2 = por %p3818_p9, %p3817_p6 }
  0x79   : > { %p3820_p4 = pnand %p3819_p2, %p3813_p11 }
  0x7b   : > { %3823 = shalt.err (!%p3820_p4)
}
  0x7c   : > { %s3972_s12 = smov 256   ;;  %s3973_s30 = smov 16  }
  0x7d   : > { %3354 = dma.hbm_to_vmem [thread:$0]  (!%p4094_p13), %s4187_s22, 4096, %s4191_s5, %s4108_s13, %s3972_s12, %s3972_s12, %s3973_s30  }
  0x7e   : > { %s4220_s21 = scalar_lea.hbm %s4887_s8, %s3107_s24  ;;  %s398_s27 = scalar_lea.vmem [#allocation11], %s2959_s20 }
  0x7f   : > { %s405_s14 = sshll.u32 %s398_s27, 4  ;;  %s395_s25 = scalar_lea.sflag [#allocation12], %s4092_s17  ;;  %s4224_s14 = int_to_ptr.vmem [resolvable:$true] %s405_s14 }
  0x80   : > { %s3824_s6 = scalar_lea.hbm %s4220_s21, 4096  ;;  %s3829_s13 = scalar_lea.hbm %s4887_s8, 16384 }
  0x81   : > { %p3825_p0 = scmp.ne.s32.totalorder %s4220_s21, %s3824_s6  ;;  %p3830_p3 = scmp.lt.u32.totalorder %s4220_s21, %s4887_s8 }
  0x82   : > { %p3831_p7 = scmp.lt.u32.totalorder %s3829_s13, %s3824_s6  ;;  %p3833_p10 = scmp.lt.u32.totalorder %s3824_s6, %s4220_s21 }
  0x83   : > { %p3827_p5 = pnand %p3825_p0, %p4114_p1 }
  0x84   : > { %p3832_p8 = por %p3831_p7, %p3830_p3 }
  0x85   : > { %p3828_p12 = pneg %p3827_p5 }
  0x86   : > { %p3834_p11 = por %p3833_p10, %p3832_p8 }
  0x88   : > { %p3835_p6 = pnand %p3834_p11, %p3828_p12 }
  0x8a   : > { %3838 = shalt.err (!%p3835_p6)
}
  0x8b   : > { %s3839_s20 = scalar_lea.vmem %s4224_s14, 4096  ;;  %s3974_s12 = smov [#allocation11]  }
  0x8c   : > { %p3840_p9 = scmp.ne.s32.totalorder %s4224_s14, %s3839_s20  ;;  %s3844_s30 = sshll.u32 %s3974_s12, 4  ;;  %s3845_s30 = int_to_ptr.vmem [resolvable:$false] %s3844_s30 }
  0x8d   : > { %s3846_s23 = scalar_lea.vmem %s3845_s30, 8192  ;;  %p3847_p0 = scmp.lt.s32.totalorder %s4224_s14, %s3845_s30 }
  0x8e   : > { %p3842_p2 = pnand %p3840_p9, %p4114_p1  ;;  %p3848_p5 = scmp.lt.s32.totalorder %s3846_s23, %s3839_s20 }
  0x90   : > { %p3843_p4 = pneg %p3842_p2  ;;  %p3849_p3 = por %p3848_p5, %p3847_p0 }
  0x92   : > { %p3850_p7 = pnand %p3849_p3, %p3843_p4 }
  0x94   : > { %3853 = shalt.err (!%p3850_p7)
}
  0x95   : > { %s4913_s0 = smov 4   ;;  %s4914_s27 = smov 64  }
  0x96   : > { %3357 = dma.hbm_to_vmem [thread:$0]  (!%p4094_p13), %s4220_s21, 4096, %s4224_s14, %s395_s25, %s4914_s27, %s4914_s27, %s4913_s0  }
  0x97   : > { %p4915_p1 = scmp.ne.s32.totalorder %s4910_s19, 0 }
  0x98   : > { %s440_s15 = sand.u32 (!%p4915_p1), 1, %s3950_s26   ;;  %p4916_p12 = scmp.ne.s32.totalorder (!%p4915_p1), %s4906_s16, 0 }
  0x99   : > { %438 = sbr.rel (%p4915_p1) target bundleno = 4168 (0x1048), region = 60  ;;  %s441_s5 = scalar_lea.sflag (!%p4915_p1), [#allocation6], %s440_s15 }
  0x9a   : > { %s3331_s6 = smul.u32 (!%p4915_p1), 192, %s440_s15 }
  0x9c   : > { %s4256_s28 = scalar_lea.vmem (!%p4915_p1), [#allocation5], %s3331_s6 }
  0xa0   : > { %3927 = dma.done.wait (%p4916_p12), %s441_s5, 3072  }
  0xa1   : > { %3929 = vsyncadd (%p4916_p12), %s441_s5, 4294964224  ;;  %s449_s17 = sand.u32 1, %s4070_s29   ;;  %s2966_s18 = sshll.u32 %s440_s15, 6 }
  0xa2   : > { %s450_s21 = scalar_lea.sflag [#allocation9], %s449_s17  ;;  %s4263_s14 = scalar_lea.vmem [#allocation8], %s2966_s18 }
  0xa3   : > { %3931 = dma.done.wait (%p4916_p12), %s450_s21, 5120  }
  0xa4   : > { %3933 = vsyncadd (%p4916_p12), %s450_s21, 4294962176  ;;  %s2967_s19 = sshll.u32 %s440_s15, 8  ;;  %s468_s13 = scalar_lea.sflag [#allocation12], %s440_s15 }
  0xa5   : > { %s4269_s25 = scalar_lea.vmem [#allocation10], %s2967_s19  ;;  %s4271_s24 = scalar_lea.vmem [#allocation11], %s2967_s19 }
  0xa6   : > { %3935 = dma.done.wait (%p4916_p12), %s468_s13, 4096  }
  0xa7   : > { %3937 = vsyncadd (%p4916_p12), %s468_s13, 4294963200  ;;  %p530_p13 = scmp.lt.s32.totalorder %s4070_s29, 3  ;;  %p2971_p8 = scmp.ne.s32.totalorder %s4070_s29, 0 }
  0xa8   : > { %s4295_s21 = smov (!%p2971_p8), 0  }
  0xa9   : > { %s531_s22 = scalar_select %p530_p13, %s4070_s29, 3 }
  0xaa   : > { %546 = sbr.rel (%p2971_p8) target bundleno = 217 (0xd9), region = 80 }
  0xab   : > { %s2969_s20 = sshll.u32 %s531_s22, 3  ;;  %s3332_s12 = smul.u32 3, %s531_s22 }
  0xac   : > { %s4282_s0 = scalar_lea.vmem %s4888_s9, %s2969_s20  ;;  %s2970_s27 = sshll.u32 %s531_s22, 2 }
  0xad   : > { %s4287_s5 = scalar_lea.vmem %s4889_s10, %s3332_s12  ;;  %s4292_s18 = scalar_lea.vmem %s4890_s11, %s2970_s27 }
  0xb1 LB: >> { %s553_s19 = sld [smem:[#allocation4 + %s3962_s21]]  ;;  %s3962_s21 = sphi %s4295_s21, %s552_s21  }
  0xb2   : >> { %s556_s30 = scalar_lea.vmem [#allocation2], %s3962_s21  ;;  %s3856_s17 = scalar_lea.hbm %s4880_s1, 8192 }
  0xb3   : >> { %s564_s23 = sshll.u32 %s556_s30, 4  ;;  %s565_s23 = int_to_ptr.vmem [resolvable:$true] %s564_s23 }
  0xb7   : >> { %s2972_s13 = sshll.u32 %s553_s19, 4 }
  0xb8   : >> { %s555_s12 = scalar_lea.hbm %s4880_s1, %s2972_s13 }
  0xb9   : >> { %s3854_s27 = scalar_lea.hbm %s555_s12, 16  ;;  %p3857_p11 = scmp.lt.u32.totalorder %s555_s12, %s4880_s1 }
  0xba   : >> { %p3855_p10 = scmp.ne.s32.totalorder %s555_s12, %s3854_s27  ;;  %p3858_p6 = scmp.lt.u32.totalorder %s3856_s17, %s3854_s27 }
  0xbb   : >> { %p3860_p2 = scmp.lt.u32.totalorder %s3854_s27, %s555_s12 }
  0xbc   : >> { %p3859_p9 = por %p3858_p6, %p3857_p11 }
  0xbe   : >> { %p3861_p4 = por %p3860_p2, %p3859_p9 }
  0xc0   : >> { %p3862_p0 = pnand %p3861_p4, %p3855_p10 }
  0xc2   : >> { %3865 = shalt.err (!%p3862_p0)  }
  0xc3   : >> { %s3866_s19 = scalar_lea.vmem %s565_s23, 16  ;;  %s3975_s13 = smov [#allocation2]  }
  0xc4   : >> { %p3867_p5 = scmp.ne.s32.totalorder %s565_s23, %s3866_s19  ;;  %s3868_s22 = sshll.u32 %s3975_s13, 4  ;;  %s3869_s22 = int_to_ptr.vmem [resolvable:$false] %s3868_s22 }
  0xc5   : >> { %s3870_s20 = scalar_lea.vmem %s3869_s22, 512  ;;  %p3871_p3 = scmp.lt.s32.totalorder %s565_s23, %s3869_s22 }
  0xc6   : >> { %p3872_p7 = scmp.lt.s32.totalorder %s3870_s20, %s3866_s19 }
  0xc8   : >> { %p3873_p1 = por %p3872_p7, %p3871_p3 }
  0xca   : >> { %p3874_p12 = pnand %p3873_p1, %p3867_p5 }
  0xcc   : >> { %3877 = shalt.err (!%p3874_p12)  }
  0xcd   : >> { %567 = dma.hbm_to_vmem [thread:$0]  %s555_s12, 16, %s565_s23, [#allocation14] }
  0xce   : >> { %3938 = dma.done.wait [#allocation14], 16 }
  0xcf   : >> { %3939 = vsyncadd [#allocation14], 4294967280  ;;  %s552_s21 = sadd.s32 1, %s3962_s21  }
  0xd0   : >> { %p549_p13 = scmp.ge.s32.totalorder %s552_s21, 32  }
  0xd1   : > { %v571_v0 = vld [vmem:[#allocation2] sm:$0xff] (%p549_p13)  ;;  %v575_v1 = vld [vmem:[%s4881_s2] sm:$0xff] (%p549_p13)  ;;  %v572_v2 = vld [vmem:[#allocation2 + $0x8] sm:$0xff] (%p549_p13) }
  0xd2   : > { %551 = sbr.rel (!%p549_p13) target bundleno = 177 (0xb1), region = 165  ;;  %v579_v3 = vadd.f32 (%p549_p13), %v575_v1, %v571_v0  ;;  %v576_v4 = vld [vmem:[%s4881_s2 + $0x8] sm:$0xff] (%p549_p13)  ;;  %v573_v5 = vld [vmem:[#allocation2 + $0x10] sm:$0xff] (%p549_p13)  ;;  %v577_v6 = vld [vmem:[%s4881_s2 + $0x10] sm:$0xff] (%p549_p13) }
  0xd3   : > { %v580_v7 = vadd.f32 (%p549_p13), %v576_v4, %v572_v2  ;;  %v581_v8 = vadd.f32 (%p549_p13), %v577_v6, %v573_v5  ;;  %v574_v9 = vld [vmem:[#allocation2 + $0x18] sm:$0xff] (%p549_p13)  ;;  %v578_v10 = vld [vmem:[%s4881_s2 + $0x18] sm:$0xff] (%p549_p13) }
  0xd4   : > { %583 = vst [vmem:[#allocation2] sm:$0xff] (%p549_p13), %v579_v3  ;;  %v582_v11 = vadd.f32 (%p549_p13), %v578_v10, %v574_v9 }
  0xd5   : > { %584 = vst [vmem:[#allocation2 + $0x8] sm:$0xff] (%p549_p13), %v580_v7  ;;  %585 = vst [vmem:[#allocation2 + $0x10] sm:$0xff] (%p549_p13), %v581_v8 }
  0xd6   : > { %586 = vst [vmem:[#allocation2 + $0x18] sm:$0xff] (%p549_p13), %v582_v11 }
  0xd9 PF: > { %v3445_v16 = vld [vmem:[%s4256_s28 + $0x4] ss:$12 sps:$4 sm:$0xff]   ;;  %v3447_v17 = vld [vmem:[%s4256_s28] ss:$12 sps:$4 sm:$0xff]   ;;  %v3448_v18 = vld [vmem:[%s4256_s28 + $0x1c] ss:$12 sps:$4 sm:$0xff]   ;;  %v641_v62 = vlaneseq }
  0xda   : > { %v3450_v19 = vld [vmem:[%s4256_s28 + $0x8] ss:$12 sps:$4 sm:$0xff]   ;;  %836 = vmatprep.subr.bf16.mxu0 %v3445_v16  ;;  %v3451_v36 = vld [vmem:[%s4256_s28 + $0x18] ss:$12 sps:$4 sm:$0xff]   ;;  %v3454_v38 = vld [vmem:[%s4256_s28 + $0x20] ss:$12 sps:$4 sm:$0xff]  }
  0xdb   : > { %v587_v12 = vld [vmem:[#allocation2] sm:$0xff]  ;;  %837 = vmatpush1.bf16.msra.mxu0 %v3447_v17  ;;  %3217 = vmatprep.subr.bf16.mxu1 %v3450_v19  ;;  %v3455_v39 = vld [vmem:[%s4256_s28 + $0x30] ss:$12 sps:$4 sm:$0xff]   ;;  %v3456_v40 = vld [vmem:[%s4256_s28 + $0x4c] ss:$12 sps:$4 sm:$0xff]   ;;  %v3976_v51 = vmov 0  }
  0xdc   : > { %v589_v13 = vld [vmem:[#allocation2 + $0x10] sm:$0xff]  ;;  %v588_v14 = vld [vmem:[#allocation2 + $0x8] sm:$0xff]  ;;  %596 = vadd.xlane.f32.xlu0 %v587_v12  ;;  %838 = vmatprep.subr.bf16.mxu0 %v3448_v18  ;;  %v3458_v41 = vld [vmem:[%s4256_s28 + $0x38] ss:$12 sps:$4 sm:$0xff]   ;;  %v4367_v4 = vshrl.u32 %v641_v62, 7  ;;  %vm944_vm0 = vcmask 261120  }
  0xdd   : > { %600 = vadd.xlane.f32.xlu1 %v589_v13  ;;  %v590_v15 = vld [vmem:[#allocation2 + $0x18] sm:$0xff]  ;;  %3218 = vmatpush3.bf16.msra.mxu1 %v3450_v19  ;;  %v3452_v37 = vld [vmem:[%s4256_s28 + $0x34] ss:$12 sps:$4 sm:$0xff]   ;;  %v3460_v43 = vld [vmem:[%s4256_s28 + $0x64] ss:$12 sps:$4 sm:$0xff]   ;;  %s3977_s7 = smov 96  }
  0xde   : > { %3219 = vmatprep.subr.bf16.mxu1 %v3454_v38  ;;  %v3459_v42 = vld [vmem:[%s4256_s28 + $0x48] ss:$12 sps:$4 sm:$0xff]   ;;  %v3462_v44 = vld [vmem:[%s4256_s28 + $0x50] ss:$12 sps:$4 sm:$0xff]   ;;  %v3463_v45 = vld [vmem:[%s4256_s28 + $0x60] ss:$12 sps:$4 sm:$0xff]   ;;  %868 = vmatprep.mubr.bf16.mxu0 %v3976_v51 }
  0xdf   : > { %839 = vmatpush1.bf16.msra.mxu0 %v3451_v36  ;;  %v3464_v46 = vld [vmem:[%s4256_s28 + $0x7c] ss:$12 sps:$4 sm:$0xff]   ;;  %v3467_v48 = vld [vmem:[%s4256_s28 + $0x78] ss:$12 sps:$4 sm:$0xff]   ;;  %v3468_v49 = vld [vmem:[%s4256_s28 + $0x94] ss:$12 sps:$4 sm:$0xff]  }
  0xe0   : > { %598 = vadd.xlane.f32.xlu0 %v588_v14  ;;  %840 = vmatprep.subr.bf16.mxu0 %v3452_v37  ;;  %v3466_v47 = vld [vmem:[%s4256_s28 + $0x68] ss:$12 sps:$4 sm:$0xff]   ;;  %v3470_v50 = vld [vmem:[%s4256_s28 + $0x80] ss:$12 sps:$4 sm:$0xff]   ;;  %v3471_v52 = vld [vmem:[%s4256_s28 + $0x90] ss:$12 sps:$4 sm:$0xff]  }
  0xe1   : > { %602 = vadd.xlane.f32.xlu1 %v590_v15  ;;  %3220 = vmatpush3.bf16.msra.mxu1 %v3454_v38  ;;  %v3472_v53 = vld [vmem:[%s4256_s28 + $0xac] ss:$12 sps:$4 sm:$0xff]   ;;  %v3475_v55 = vld [vmem:[%s4256_s28 + $0xa8] ss:$12 sps:$4 sm:$0xff]   ;;  %v3476_v56 = vld [vmem:[%s4256_s28 + $0xb0] ss:$12 sps:$4 sm:$0xff]  }
  0xe2   : > { %3221 = vmatprep.subr.bf16.mxu1 %v3458_v41  ;;  %v3474_v54 = vld [vmem:[%s4256_s28 + $0x98] ss:$12 sps:$4 sm:$0xff]   ;;  %v4370_v7 = vsub.s32 0, %v4367_v4  ;;  %s3978_s30 = smov 64   ;;  %s3979_s27 = smov 32   ;;  %vm1693_vm1 = vcmask 523264  }
  0xe3   : > { %841 = vmatpush1.bf16.msra.mxu0 %v3455_v39  ;;  %v4373_v8 = vld [vmem:[%s4282_s0] sm:$0x3f]  ;;  %vm1698_vm2 = vcmask 785408   ;;  %p3101_p8 = scmp.ne.s32.totalorder %s4070_s29, 3 }
  0xe4   : > { %842 = vmatprep.subr.bf16.mxu0 %v3456_v40  ;;  %v644_v11 = vrot.slane %v4373_v8, %v4370_v7 }
  0xe5   : > { %3222 = vmatpush3.bf16.msra.mxu1 %v3458_v41 }
  0xe6   : > { %3223 = vmatprep.subr.bf16.mxu1 %v3462_v44 }
  0xe7   : > { %843 = vmatpush1.bf16.msra.mxu0 %v3459_v42 }
  0xe8   : > { %844 = vmatprep.subr.bf16.mxu0 %v3460_v43 }
  0xe9   : > { %3224 = vmatpush3.bf16.msra.mxu1 %v3462_v44 }
  0xea   : > { %3225 = vmatprep.subr.bf16.mxu1 %v3466_v47 }
  0xeb   : > { %845 = vmatpush1.bf16.msra.mxu0 %v3463_v45 }
  0xec   : > { %846 = vmatprep.subr.bf16.mxu0 %v3464_v46 }
  0xed   : > { %3226 = vmatpush3.bf16.msra.mxu1 %v3466_v47 }
  0xee   : > { %3227 = vmatprep.subr.bf16.mxu1 %v3470_v50 }
  0xef   : > { %847 = vmatpush1.bf16.msra.mxu0 %v3467_v48 }
  0xf0   : > { %848 = vmatprep.subr.bf16.mxu0 %v3468_v49 }
  0xf1   : > { %3228 = vmatpush3.bf16.msra.mxu1 %v3470_v50 }
  0xf2   : > { %3229 = vmatprep.subr.bf16.mxu1 %v3474_v54 }
  0xf3   : > { %849 = vmatpush1.bf16.msra.mxu0 %v3471_v52 }
  0xf4   : > { %850 = vmatprep.subr.bf16.mxu0 %v3472_v53 }
  0xf5   : > { %3230 = vmatpush3.bf16.msra.mxu1 %v3474_v54 }
  0xf6   : > { %3231 = vmatprep.subr.bf16.mxu1 %v3476_v56 }
  0xf7   : > { %851 = vmatpush1.bf16.msra.mxu0 %v3475_v55 }
  0xf9   : > { %3232 = vmatpush3.bf16.msra.mxu1 %v3476_v56 }
 0x169   : > { %v597_v20 = vpop.xlane.xlu0 %596 }
 0x16a   : > { %v601_v21 = vpop.xlane.xlu1 %600  ;;  %v605_v22 = vmul.f32 0.0078125, %v597_v20 }
 0x16b   : > { %v607_v23 = vmul.f32 0.0078125, %v601_v21 }
 0x16c   : > { %v4330_v24 = vsub.f32 %v587_v12, %v605_v22  ;;  %v4379_v12 = vsub.s32 1, %v4367_v4 }
 0x16d   : > { %v4332_v25 = vsub.f32 %v589_v13, %v607_v23  ;;  %v599_v26 = vpop.xlane.xlu0 %598 }
 0x16e   : > { %v603_v27 = vpop.xlane.xlu1 %602  ;;  %v606_v28 = vmul.f32 0.0078125, %v599_v26  ;;  %v613_v29 = vmul.f32 %v4330_v24, %v4330_v24  ;;  %v652_v17 = vrot.slane %v4373_v8, %v4379_v12 }
 0x16f   : > { %v608_v30 = vmul.f32 0.0078125, %v603_v27  ;;  %v615_v33 = vmul.f32 %v4332_v25, %v4332_v25 }
 0x170   : > { %v4336_v31 = vsub.f32 %v588_v14, %v606_v28  ;;  %617 = vadd.xlane.f32.xlu0 %v613_v29 }
 0x171   : > { %v4338_v32 = vsub.f32 %v590_v15, %v608_v30 }
 0x172   : > { %v614_v34 = vmul.f32 %v4336_v31, %v4336_v31 }
 0x173   : > { %v616_v35 = vmul.f32 %v4338_v32, %v4338_v32 }
 0x174   : > { %621 = vadd.xlane.f32.xlu0 %v615_v33  ;;  %619 = vadd.xlane.f32.xlu1 %v614_v34  ;;  %v4390_v33 = vsub.s32 2, %v4367_v4 }
 0x178   : > { %623 = vadd.xlane.f32.xlu1 %v616_v35 }
 0x1fd   : > { %v618_v57 = vpop.xlane.xlu0 %617 }
 0x1fe   : > { %v625_v58 = vmul.f32 0.0078125, %v618_v57 }
 0x200   : > { %v629_v59 = vadd.f32 1e-05, %v625_v58 }
 0x201   : > { %v620_v60 = vpop.xlane.xlu1 %619  ;;  %v622_v61 = vpop.xlane.xlu0 %621 }
 0x202   : > { %3565 = vrsqrt.f32 %v629_v59  ;;  %v626_v63 = vmul.f32 0.0078125, %v620_v60  ;;  %v627_v0 = vmul.f32 0.0078125, %v622_v61 }
 0x204   : > { %v630_v1 = vadd.f32 1e-05, %v626_v63  ;;  %v631_v2 = vadd.f32 1e-05, %v627_v0 }
 0x205   : > { %v624_v3 = vpop.xlane.xlu1 %623 }
 0x206   : > { %3567 = vrsqrt.f32 %v630_v1  ;;  %v628_v5 = vmul.f32 0.0078125, %v624_v3 }
 0x207   : > { %3569 = vrsqrt.f32 %v631_v2 }
 0x208   : > { %v632_v6 = vadd.f32 1e-05, %v628_v5  ;;  %v4425_v5 = vld [vmem:[%s4882_s3] sm:$0xff] }
 0x20a   : > { %3571 = vrsqrt.f32 %v632_v6 }
 0x20c   : > { %v3566_v9 = vpop.eup %3565 }
 0x20d   : > { %v637_v10 = vmul.f32 %v3566_v9, %v4330_v24  ;;  %v4430_v9 = vld [vmem:[%s4882_s3 + $0x10] sm:$0xff] }
 0x20f   : > { %v645_v16 = vmul.f32 %v644_v11, %v637_v10 }
 0x210   : > { %v3568_v13 = vpop.eup %3567 }
 0x211   : > { %v3570_v14 = vpop.eup %3569  ;;  %v638_v15 = vmul.f32 %v3568_v13, %v4336_v31  ;;  %v653_v21 = vadd.f32 %v652_v17, %v645_v16 }
 0x212   : > { %v639_v18 = vmul.f32 %v3570_v14, %v4332_v25  ;;  %v691_v25 = vld [vmem:[%s4287_s5] sm:$0x7] }
 0x213   : > { %v646_v19 = vmul.f32 %v644_v11, %v638_v15  ;;  %v696_v31 = vrot.slane %v691_v25, %v4370_v7  ;;  %v704_v40 = vrot.slane %v691_v25, %v4390_v33  ;;  %v4441_v15 = vld [vmem:[%s4882_s3 + $0x18] sm:$0xff] }
 0x214   : > { %v3572_v20 = vpop.eup %3571  ;;  %v647_v24 = vmul.f32 %v644_v11, %v639_v18 }
 0x215   : > { %v654_v22 = vadd.f32 %v652_v17, %v646_v19  ;;  %v640_v23 = vmul.f32 %v3572_v20, %v4338_v32  ;;  %v700_v32 = vrot.slane %v691_v25, %v4379_v12 }
 0x216   : > { %v655_v28 = vadd.f32 %v652_v17, %v647_v24 }
 0x217   : > { %v657_v26 = vpack.c.bf16 %v654_v22, %v653_v21  ;;  %v648_v27 = vmul.f32 %v644_v11, %v640_v23  ;;  %v4435_v11 = vld [vmem:[%s4882_s3 + $0x8] sm:$0xff] }
 0x219   : > { %869 = vmatmul.mubr.bf16.vlgmr.msra.gmra.mrb[0].mxu0 %v657_v26  ;;  %3233 = vmatprep.mubr.bf16.mxu1 %v657_v26  ;;  %v656_v29 = vadd.f32 %v652_v17, %v648_v27 }
 0x21a   : > { %878 = vmatprep.mubr.bf16.mxu0 %v3976_v51 }
 0x21b   : > { %v658_v30 = vpack.c.bf16 %v656_v29, %v655_v28 }
 0x21d   : > { %3234 = vmatmul.mubr.bf16.vlgmr.msra.gmra.mrb[0].mxu1 %v658_v30 }
 0x221   : > { %879 = vmatmul.mubr.bf16.gmra.mrb[4].mxu0 %v658_v30 }
 0x2ec   : > { %v870_v34 = vpop.f32.mrb[0].mxu0 }
 0x2ed   : > { %v872_v35 = vpop.f32.mrb[1].mxu0  ;;  %v871_v37 = vadd.f32 %v870_v34, %v696_v31 }
 0x2ee   : > { %v874_v36 = vpop.f32.mrb[2].mxu0  ;;  %v873_v41 = vadd.f32 %v872_v35, %v700_v32 }
 0x2ef   : > { %v875_v38 = vadd.f32 %v874_v36, %v696_v31  ;;  %v876_v39 = vpop.f32.mrb[3].mxu0 }
 0x2f0   : > { %v877_v42 = vadd.f32 %v876_v39, %v700_v32  ;;  %v3235_v43 = vpop.f32.mrb[0].mxu1 }
 0x2f1   : > { %v4394_v44 = vpack.c.bf16 %v875_v38, %v871_v37  ;;  %v923_v45 = vpop.f32.mrb[1].mxu1  ;;  %v932_v48 = vadd.f32 %v3235_v43, %v704_v40 }
 0x2f2   : > { %v4396_v46 = vpack.c.bf16 %v877_v42, %v873_v41  ;;  %v3236_v47 = vpop.f32.mrb[2].mxu1  ;;  %v924_v52 = vadd.f32 %v923_v45, %v704_v40 }
 0x2f3   : > { %v935_v49 = vadd.f32 %v3236_v47, %v704_v40  ;;  %v926_v50 = vpop.f32.mrb[3].mxu1  ;;  %3241 = vmatprep.mubr.msk.bf16.mxu0 %vm944_vm0, %v4394_v44 }
 0x2f4   : > { %v927_v53 = vadd.f32 %v926_v50, %v704_v40  ;;  %v880_v54 = vpop.f32.mrb[4].mxu0  ;;  %3321 = vmatprep.subr.msk.bf16.mxu0 %vm944_vm0, %v4396_v46  ;;  %v952_v55 = vsel %vm944_vm0, %v4396_v46, 0 }
 0x2f5   : > { %v4404_v56 = vpack.c.bf16 %v935_v49, %v932_v48  ;;  %v882_v57 = vpop.f32.mrb[5].mxu0  ;;  %3238 = vmatpush3.bf16.xpose.msra.mxu0 %v952_v55  ;;  %v881_v60 = vadd.f32 %v880_v54, %v696_v31 }
 0x2f6   : > { %v4406_v58 = vpack.c.bf16 %v927_v53, %v924_v52  ;;  %v884_v59 = vpop.f32.mrb[6].mxu0  ;;  %v883_v63 = vadd.f32 %v882_v57, %v700_v32 }
 0x2f7   : > { %v885_v61 = vadd.f32 %v884_v59, %v696_v31  ;;  %v886_v62 = vpop.f32.mrb[7].mxu0 }
 0x2f8   : > { %v887_v0 = vadd.f32 %v886_v62, %v700_v32  ;;  %3245 = vmatprep.subr.bf16.mxu1 %v4406_v58 }
 0x2f9   : > { %v4409_v1 = vpack.c.bf16 %v885_v61, %v881_v60  ;;  %3246 = vmatpush3.bf16.msra.mxu1 %v4406_v58 }
 0x2fa   : > { %v4412_v2 = vpack.c.bf16 %v887_v0, %v883_v63  ;;  %3247 = vmatprep.subr.bf16.mxu1 %v4404_v56 }
 0x2fc   : > { %3322 = vmatprep.subr.msk.bf16.mxu0 %vm944_vm0, %v4412_v2  ;;  %v955_v3 = vsel %vm944_vm0, %v4412_v2, 0 }
 0x2fd   : > { %3240 = vmatpush3.bf16.xpose.msra.mxu0 %v955_v3  ;;  %3248 = vmatpush3.bf16.msra.mxu1 %v4404_v56 }
 0x304   : > { %3242 = vmatmul.mubr.msk.bf16.vlgmr.msra.gmra.mrb[8].mxu0 %vm944_vm0, %v4409_v1 }
 0x3d7   : > { %v3243_v6 = vpop.f32.mrb[8].mxu0 }
 0x3d8   : > { %v991_v10 = vpop.f32.mrb[9].mxu0  ;;  %v1000_v17 = vadd.f32 %v3243_v6, %v4430_v9 }
 0x3d9   : > { %v992_v13 = vadd.f32 %v991_v10, %v4425_v5  ;;  %v3244_v14 = vpop.f32.mrb[10].mxu0 }
 0x3da   : > { %v994_v16 = vpop.f32.mrb[11].mxu0  ;;  %v1003_v20 = vadd.f32 %v3244_v14, %v4441_v15  ;;  %v1012_v22 = vsel %vm944_vm0, %v1000_v17, -inf }
 0x3db   : > { %v995_v18 = vadd.f32 %v994_v16, %v4435_v11  ;;  %v1006_v19 = vsel %vm944_vm0, %v992_v13, -inf }
 0x3dc   : > { %1007 = vmax.xlane.f32.xlu0 %v1006_v19  ;;  %v1015_v23 = vsel %vm944_vm0, %v1003_v20, -inf }
 0x3dd   : > { %v1009_v21 = vsel %vm944_vm0, %v995_v18, -inf }
 0x3de   : > { %1010 = vmax.xlane.f32.xlu1 %v1009_v21 }
 0x3e0   : > { %1013 = vmax.xlane.f32.xlu0 %v1012_v22 }
 0x3e2   : > { %1016 = vmax.xlane.f32.xlu1 %v1015_v23 }
 0x469   : > { %v1008_v24 = vpop.xlane.xlu0 %1007 }
 0x46a   : > { %v1018_v26 = vsub.f32 %v992_v13, %v1008_v24 }
 0x46b   : > { %v1011_v27 = vpop.xlane.xlu1 %1010 }
 0x46c   : > { %v1019_v28 = vsub.f32 %v995_v18, %v1011_v27  ;;  %v1022_v31 = vmul.f32 1.442695, %v1018_v26 }
 0x46d   : > { %v1014_v29 = vpop.xlane.xlu0 %1013 }
 0x46e   : > { %v1024_v30 = vmul.f32 1.442695, %v1019_v28  ;;  %v1020_v25 = vsub.f32 %v1000_v17, %v1014_v29 }
 0x46f   : > { %v1017_v34 = vpop.xlane.xlu1 %1016 }
 0x470   : > { %3573 = vpow2.f32 %v1024_v30  ;;  %v1026_v32 = vmul.f32 1.442695, %v1020_v25  ;;  %v1021_v35 = vsub.f32 %v1003_v20, %v1017_v34 }
 0x472   : > { %3575 = vpow2.f32 %v1026_v32  ;;  %v1028_v36 = vmul.f32 1.442695, %v1021_v35 }
 0x473   : > { %3577 = vpow2.f32 %v1022_v31 }
 0x474   : > { %3579 = vpow2.f32 %v1028_v36 }
 0x47a   : > { %v3574_v37 = vpop.eup %3573 }
 0x47b   : > { %v1033_v38 = vsel %vm944_vm0, %v3574_v37, 0.0 }
 0x47c   : > { %v3576_v39 = vpop.eup %3575  ;;  %1034 = vadd.xlane.f32.xlu1 %v1033_v38 }
 0x47d   : > { %v3578_v40 = vpop.eup %3577  ;;  %v1036_v41 = vsel %vm944_vm0, %v3576_v39, 0.0 }
 0x47e   : > { %v3580_v42 = vpop.eup %3579  ;;  %1037 = vadd.xlane.f32.xlu0 %v1036_v41  ;;  %v1030_v45 = vsel %vm944_vm0, %v3578_v40, 0.0 }
 0x47f   : > { %v1039_v43 = vsel %vm944_vm0, %v3580_v42, 0.0 }
 0x480   : > { %1040 = vadd.xlane.f32.xlu1 %v1039_v43 }
 0x482   : > { %1031 = vadd.xlane.f32.xlu0 %v1030_v45 }
 0x491   : > { %1117 = vrot.lane.b32.xlu1 %v4412_v2, %s3977_s7 }
 0x495   : > { %1109 = vrot.lane.b32.xlu1 %v4394_v44, %s3977_s7 }
 0x498   : > { %1115 = vrot.lane.b32.xlu0 %v4396_v46, %s3977_s7 }
 0x499   : > { %1293 = vrot.lane.b32.xlu1 %v4396_v46, %s3978_s30 }
 0x49c   : > { %1111 = vrot.lane.b32.xlu0 %v4409_v1, %s3977_s7 }
 0x49d   : > { %1295 = vrot.lane.b32.xlu1 %v4412_v2, %s3978_s30 }
 0x4a0   : > { %1289 = vrot.lane.b32.xlu0 %v4394_v44, %s3978_s30 }
 0x4a1   : > { %1291 = vrot.lane.b32.xlu1 %v4409_v1, %s3978_s30 }
 0x509   : > { %v1035_v47 = vpop.xlane.xlu1 %1034 }
 0x50a   : > { %3581 = vrcp.f32 %v1035_v47 }
 0x50b   : > { %v1038_v48 = vpop.xlane.xlu0 %1037 }
 0x50d   : > { %v1041_v49 = vpop.xlane.xlu1 %1040 }
 0x50e   : > { %3583 = vrcp.f32 %v1041_v49 }
 0x50f   : > { %3585 = vrcp.f32 %v1038_v48  ;;  %v1032_v50 = vpop.xlane.xlu0 %1031 }
 0x510   : > { %3587 = vrcp.f32 %v1032_v50 }
 0x511   : > { %v1118_v60 = vpop.permute.xlu1 %1117 }
 0x512   : > { %v1129_v13 = vsel %vm944_vm0, %v1118_v60, 0 }
 0x513   : > { %v1116_v52 = vpop.permute.xlu0 %1115 }
 0x514   : > { %3323 = vmatprep.subr.msk.bf16.mxu1 %vm944_vm0, %v1116_v52  ;;  %v3582_v53 = vpop.eup %3581  ;;  %v1126_v6 = vsel %vm944_vm0, %v1116_v52, 0 }
 0x515   : > { %v1047_v62 = vmul.f32 %v3582_v53, %v3574_v37  ;;  %v1110_v10 = vpop.permute.xlu1 %1109 }
 0x517   : > { %v1112_v16 = vpop.permute.xlu0 %1111 }
 0x518   : > { %v3584_v54 = vpop.eup %3583 }
 0x519   : > { %v3586_v55 = vpop.eup %3585  ;;  %v1049_v59 = vmul.f32 %v3584_v54, %v3580_v42  ;;  %v1294_v14 = vpop.permute.xlu1 %1293 }
 0x51a   : > { %v3588_v57 = vpop.eup %3587  ;;  %v1048_v63 = vmul.f32 %v3586_v55, %v3576_v39  ;;  %v1304_v17 = vsel %vm944_vm0, %v1294_v14, 0 }
 0x51b   : > { %v1046_v61 = vmul.f32 %v3588_v57, %v3578_v40  ;;  %v1290_v18 = vpop.permute.xlu0 %1289 }
 0x51c   : > { %v1051_v3 = vpack.c.bf16 %v1049_v59, %v1048_v63 }
 0x51d   : > { %v1050_v0 = vpack.c.bf16 %v1047_v62, %v1046_v61  ;;  %v1296_v19 = vpop.permute.xlu1 %1295 }
 0x51e   : > { %v1307_v20 = vsel %vm944_vm0, %v1296_v19, 0 }
 0x51f   : > { %3249 = vmatprep.mubr.msk.bf16.mxu1 %vm944_vm0, %v1050_v0 }
 0x520   : > { %3250 = vmatmul.mubr.msk.bf16.vlgmr.msra.gmra.mrb[4].mxu1 %vm944_vm0, %v1051_v3 }
 0x521   : > { %3254 = vmatpush3.bf16.xpose.msra.mxu1 %v1126_v6  ;;  %3257 = vmatprep.mubr.msk.bf16.mxu1 %vm944_vm0, %v1110_v10  ;;  %v1292_v21 = vpop.permute.xlu1 %1291 }
 0x522   : > { %3324 = vmatprep.subr.msk.bf16.mxu1 %vm944_vm0, %v1118_v60 }
 0x529   : > { %3256 = vmatpush3.bf16.xpose.msra.mxu1 %v1129_v13 }
 0x52a   : > { %3325 = vmatprep.subr.msk.bf16.mxu1 %vm944_vm0, %v1294_v14 }
 0x530   : > { %3258 = vmatmul.mubr.msk.bf16.vlgmr.msra.gmra.mrb[8].mxu1 %vm944_vm0, %v1112_v16 }
 0x531   : > { %3270 = vmatpush3.bf16.xpose.msra.mxu1 %v1304_v17  ;;  %3273 = vmatprep.mubr.msk.bf16.mxu1 %vm944_vm0, %v1290_v18 }
 0x532   : > { %3326 = vmatprep.subr.msk.bf16.mxu1 %vm944_vm0, %v1296_v19 }
 0x539   : > { %3272 = vmatpush3.bf16.xpose.msra.mxu1 %v1307_v20 }
 0x540   : > { %3274 = vmatmul.mubr.msk.bf16.vlgmr.msra.gmra.mrb[12].mxu1 %vm944_vm0, %v1292_v21 }
 0x5f3   : > { %v4484_v22 = vpop.f32.mrb[4].mxu1 }
 0x5f4   : > { %v4486_v23 = vpop.f32.mrb[5].mxu1 }
 0x5f5   : > { %v4488_v24 = vpop.f32.mrb[6].mxu1 }
 0x5f6   : > { %v4490_v26 = vpop.f32.mrb[7].mxu1 }
 0x603   : > { %v3259_v27 = vpop.f32.mrb[8].mxu1 }
 0x604   : > { %v1165_v28 = vpop.f32.mrb[9].mxu1  ;;  %v4520_v14 = vadd.f32 %v3259_v27, %v4430_v9 }
 0x605   : > { %v3260_v29 = vpop.f32.mrb[10].mxu1  ;;  %v4517_v13 = vadd.f32 %v1165_v28, %v4425_v5 }
 0x606   : > { %v1168_v30 = vpop.f32.mrb[11].mxu1  ;;  %v4525_v16 = vadd.f32 %v3260_v29, %v4441_v15 }
 0x613   : > { %v3275_v25 = vpop.f32.mrb[12].mxu1 }
 0x614   : > { %v1343_v31 = vpop.f32.mrb[13].mxu1  ;;  %v1352_v36 = vadd.f32 %v3275_v25, %v4430_v9 }
 0x615   : > { %v1344_v34 = vadd.f32 %v1343_v31, %v4425_v5  ;;  %v3276_v32 = vpop.f32.mrb[14].mxu1 }
 0x616   : > { %v1346_v35 = vpop.f32.mrb[15].mxu1  ;;  %v1355_v40 = vadd.f32 %v3276_v32, %v4441_v15  ;;  %v1364_v41 = vsel %vm944_vm0, %v1352_v36, -inf }
 0x617   : > { %v1347_v37 = vadd.f32 %v1346_v35, %v4435_v11  ;;  %v1358_v38 = vsel %vm944_vm0, %v1344_v34, -inf }
 0x618   : > { %1359 = vmax.xlane.f32.xlu0 %v1358_v38  ;;  %v1367_v42 = vsel %vm944_vm0, %v1355_v40, -inf }
 0x619   : > { %v1361_v39 = vsel %vm944_vm0, %v1347_v37, -inf }
 0x61a   : > { %1362 = vmax.xlane.f32.xlu1 %v1361_v39 }
 0x61c   : > { %1365 = vmax.xlane.f32.xlu0 %v1364_v41 }
 0x620   : > { %1368 = vmax.xlane.f32.xlu0 %v1367_v42 }
 0x62b   : > { %1406 = vrot.lane.b32.xlu1 %v4404_v56, %s3978_s30 }
 0x6a5   : > { %v1360_v43 = vpop.xlane.xlu0 %1359 }
 0x6a6   : > { %v1370_v45 = vsub.f32 %v1344_v34, %v1360_v43 }
 0x6a7   : > { %v1363_v47 = vpop.xlane.xlu1 %1362 }
 0x6a8   : > { %v1374_v50 = vmul.f32 1.442695, %v1370_v45  ;;  %v1371_v52 = vsub.f32 %v1347_v37, %v1363_v47 }
 0x6a9   : > { %v1366_v48 = vpop.xlane.xlu0 %1365 }
 0x6aa   : > { %v1372_v49 = vsub.f32 %v1352_v36, %v1366_v48  ;;  %v1376_v57 = vmul.f32 1.442695, %v1371_v52 }
 0x6ab   : > { %v1407_v18 = vpop.permute.xlu1 %1406 }
 0x6ac   : > { %v1378_v53 = vmul.f32 1.442695, %v1372_v49 }
 0x6ad   : > { %v1369_v54 = vpop.xlane.xlu0 %1368 }
 0x6ae   : > { %3589 = vpow2.f32 %v1378_v53  ;;  %v1373_v55 = vsub.f32 %v1355_v40, %v1369_v54 }
 0x6af   : > { %3591 = vpow2.f32 %v1374_v50 }
 0x6b0   : > { %v1380_v59 = vmul.f32 1.442695, %v1373_v55 }
 0x6b2   : > { %3593 = vpow2.f32 %v1380_v59 }
 0x6b3   : > { %3595 = vpow2.f32 %v1376_v57 }
 0x6b8   : > { %v3590_v60 = vpop.eup %3589 }
 0x6b9   : > { %v1388_v61 = vsel %vm944_vm0, %v3590_v60, 0.0  ;;  %v3592_v62 = vpop.eup %3591 }
 0x6ba   : > { %1389 = vadd.xlane.f32.xlu0 %v1388_v61  ;;  %v1382_v0 = vsel %vm944_vm0, %v3592_v62, 0.0 }
 0x6bc   : > { %v3594_v63 = vpop.eup %3593 }
 0x6bd   : > { %v1391_v3 = vsel %vm944_vm0, %v3594_v63, 0.0  ;;  %v3596_v6 = vpop.eup %3595 }
 0x6be   : > { %1383 = vadd.xlane.f32.xlu0 %v1382_v0  ;;  %1392 = vadd.xlane.f32.xlu1 %v1391_v3  ;;  %v1385_v10 = vsel %vm944_vm0, %v3596_v6, 0.0 }
 0x6c2   : > { %1386 = vadd.xlane.f32.xlu1 %v1385_v10 }
 0x6d3   : > { %1469 = vrot.lane.b32.xlu1 %v4396_v46, %s3979_s27  ;;  %v1180_v46 = vsel %vm944_vm0, %v4517_v13, -inf }
 0x6d4   : > { %1404 = vrot.lane.b32.xlu0 %v4406_v58, %s3978_s30 }
 0x6d7   : > { %1471 = vrot.lane.b32.xlu1 %v4412_v2, %s3979_s27  ;;  %v1169_v2 = vadd.f32 %v1168_v30, %v4435_v11 }
 0x6d8   : > { %1465 = vrot.lane.b32.xlu0 %v4394_v44, %s3979_s27  ;;  %v1186_v44 = vsel %vm944_vm0, %v4520_v14, -inf }
 0x6d9   : > { %v1183_v17 = vsel %vm944_vm0, %v1169_v2, -inf }
 0x6db   : > { %1467 = vrot.lane.b32.xlu1 %v4409_v1, %s3979_s27  ;;  %v1189_v1 = vsel %vm944_vm0, %v4525_v16, -inf }
 0x6f7   : > { %1181 = vmax.xlane.f32.xlu0 %v1180_v46 }
 0x6fb   : > { %1187 = vmax.xlane.f32.xlu0 %v1186_v44 }
 0x6ff   : > { %1190 = vmax.xlane.f32.xlu0 %v1189_v1  ;;  %1184 = vmax.xlane.f32.xlu1 %v1183_v17 }
 0x747   : > { %v1390_v19 = vpop.xlane.xlu0 %1389 }
 0x74b   : > { %v1393_v20 = vpop.xlane.xlu1 %1392  ;;  %v1384_v21 = vpop.xlane.xlu0 %1383 }
 0x74c   : > { %3597 = vrcp.f32 %v1393_v20 }
 0x74d   : > { %3599 = vrcp.f32 %v1384_v21 }
 0x74e   : > { %3601 = vrcp.f32 %v1390_v19 }
 0x74f   : > { %v1387_v27 = vpop.xlane.xlu1 %1386  ;;  %v1405_v28 = vpop.permute.xlu0 %1404 }
 0x750   : > { %3603 = vrcp.f32 %v1387_v27  ;;  %3277 = vmatprep.subr.bf16.mxu1 %v1405_v28 }
 0x751   : > { %3278 = vmatpush3.bf16.msra.mxu1 %v1405_v28 }
 0x752   : > { %3279 = vmatprep.subr.bf16.mxu1 %v1407_v18 }
 0x753   : > { %v1470_v29 = vpop.permute.xlu1 %1469  ;;  %v1466_v41 = vpop.permute.xlu0 %1465 }
 0x754   : > { %v1480_v40 = vsel %vm944_vm0, %v1470_v29, 0 }
 0x755   : > { %3280 = vmatpush3.bf16.msra.mxu1 %v1407_v18 }
 0x756   : > { %3327 = vmatprep.subr.msk.bf16.mxu1 %vm944_vm0, %v1470_v29  ;;  %v3598_v30 = vpop.eup %3597 }
 0x757   : > { %v3600_v25 = vpop.eup %3599  ;;  %v1401_v32 = vmul.f32 %v3598_v30, %v3594_v63  ;;  %v1472_v42 = vpop.permute.xlu1 %1471 }
 0x758   : > { %v3602_v31 = vpop.eup %3601  ;;  %v1398_v35 = vmul.f32 %v3600_v25, %v3592_v62  ;;  %v1483_v43 = vsel %vm944_vm0, %v1472_v42, 0 }
 0x759   : > { %v1400_v37 = vmul.f32 %v3602_v31, %v3590_v60 }
 0x75a   : > { %v3604_v34 = vpop.eup %3603 }
 0x75b   : > { %v1399_v36 = vmul.f32 %v3604_v34, %v3596_v6  ;;  %v1403_v39 = vpack.c.bf16 %v1401_v32, %v1400_v37  ;;  %v1468_v45 = vpop.permute.xlu1 %1467 }
 0x75d   : > { %v1402_v38 = vpack.c.bf16 %v1399_v36, %v1398_v35 }
 0x75f   : > { %3281 = vmatprep.mubr.msk.bf16.mxu1 %vm944_vm0, %v1402_v38 }
 0x760   : > { %3282 = vmatmul.mubr.msk.bf16.vlgmr.msra.gmra.mrb[16].mxu1 %vm944_vm0, %v1403_v39 }
 0x761   : > { %3286 = vmatpush3.bf16.xpose.msra.mxu1 %v1480_v40  ;;  %3289 = vmatprep.mubr.msk.bf16.mxu1 %vm944_vm0, %v1466_v41 }
 0x762   : > { %3328 = vmatprep.subr.msk.bf16.mxu1 %vm944_vm0, %v1472_v42 }
 0x769   : > { %3288 = vmatpush3.bf16.xpose.msra.mxu1 %v1483_v43 }
 0x770   : > { %3290 = vmatmul.mubr.msk.bf16.vlgmr.msra.gmra.mrb[20].mxu1 %vm944_vm0, %v1468_v45 }
 0x771   : > { %2134 = vmatprep.mubr.bf16.mxu1 %v3976_v51 }
 0x784   : > { %v1182_v47 = vpop.xlane.xlu0 %1181 }
 0x785   : > { %v1192_v59 = vsub.f32 %v4517_v13, %v1182_v47 }
 0x787   : > { %v1196_v62 = vmul.f32 1.442695, %v1192_v59 }
 0x788   : > { %v1188_v54 = vpop.xlane.xlu0 %1187 }
 0x789   : > { %v1194_v63 = vsub.f32 %v4520_v14, %v1188_v54  ;;  %3605 = vpow2.f32 %v1196_v62 }
 0x78b   : > { %v1200_v6 = vmul.f32 1.442695, %v1194_v63 }
 0x78c   : > { %v1185_v57 = vpop.xlane.xlu1 %1184  ;;  %v1191_v61 = vpop.xlane.xlu0 %1190 }
 0x78d   : > { %v1193_v60 = vsub.f32 %v1169_v2, %v1185_v57  ;;  %v1195_v3 = vsub.f32 %v4525_v16, %v1191_v61 }
 0x78f   : > { %v1198_v0 = vmul.f32 1.442695, %v1193_v60  ;;  %v1202_v46 = vmul.f32 1.442695, %v1195_v3 }
 0x791   : > { %3607 = vpow2.f32 %v1198_v0 }
 0x792   : > { %3609 = vpow2.f32 %v1200_v6 }
 0x793   : > { %3611 = vpow2.f32 %v1202_v46  ;;  %v3606_v21 = vpop.eup %3605 }
 0x79b   : > { %v3608_v27 = vpop.eup %3607 }
 0x79c   : > { %v1207_v28 = vsel %vm944_vm0, %v3608_v27, 0.0 }
 0x833   : > { %v4542_v48 = vpop.f32.mrb[16].mxu1 }
 0x834   : > { %v4544_v49 = vpop.f32.mrb[17].mxu1 }
 0x835   : > { %v4546_v50 = vpop.f32.mrb[18].mxu1 }
 0x836   : > { %v3430_v52 = vpack.i.bf16 %v4546_v50, %v4542_v48  ;;  %v4550_v53 = vpop.f32.mrb[19].mxu1 }
 0x837   : > { %v3425_v55 = vpack.i.bf16 %v4550_v53, %v4544_v49 }
 0x843   : > { %v3291_v10 = vpop.f32.mrb[20].mxu1 }
 0x844   : > { %v1519_v44 = vpop.f32.mrb[21].mxu1  ;;  %v1528_v13 = vadd.f32 %v3291_v10, %v4430_v9  ;;  %v1204_v9 = vsel %vm944_vm0, %v3606_v21, 0.0 }
 0x845   : > { %v1520_v1 = vadd.f32 %v1519_v44, %v4425_v5  ;;  %v3292_v17 = vpop.f32.mrb[22].mxu1 }
 0x846   : > { %v1522_v18 = vpop.f32.mrb[23].mxu1  ;;  %v1531_v16 = vadd.f32 %v3292_v17, %v4441_v15  ;;  %v1540_v20 = vsel %vm944_vm0, %v1528_v13, -inf }
 0x847   : > { %v1523_v2 = vadd.f32 %v1522_v18, %v4435_v11  ;;  %v1534_v14 = vsel %vm944_vm0, %v1520_v1, -inf  ;;  %v4566_v11 = vpop.eup %3609 }
 0x848   : > { %1535 = vmax.xlane.f32.xlu0 %v1534_v14  ;;  %v1543_v5 = vsel %vm944_vm0, %v1531_v16, -inf  ;;  %v4569_v29 = vpop.eup %3611  ;;  %v1210_v15 = vsel %vm944_vm0, %v4566_v11, 0.0 }
 0x849   : > { %v1537_v19 = vsel %vm944_vm0, %v1523_v2, -inf  ;;  %v1213_v30 = vsel %vm944_vm0, %v4569_v29, 0.0 }
 0x84a   : > { %1538 = vmax.xlane.f32.xlu1 %v1537_v19 }
 0x84c   : > { %1541 = vmax.xlane.f32.xlu0 %v1540_v20 }
 0x84e   : > { %1544 = vmax.xlane.f32.xlu1 %v1543_v5 }
 0x850   : > { %1205 = vadd.xlane.f32.xlu0 %v1204_v9 }
 0x852   : > { %1208 = vadd.xlane.f32.xlu1 %v1207_v28 }
 0x854   : > { %1211 = vadd.xlane.f32.xlu0 %v1210_v15 }
 0x856   : > { %1214 = vadd.xlane.f32.xlu1 %v1213_v30 }
 0x867   : > { %1230 = vrot.lane.b32.xlu1 %v4404_v56, %s3977_s7 }
 0x86b   : > { %1580 = vrot.lane.b32.xlu1 %v4406_v58, %s3979_s27 }
 0x8d5   : > { %v1536_v25 = vpop.xlane.xlu0 %1535 }
 0x8d6   : > { %v1546_v31 = vsub.f32 %v1520_v1, %v1536_v25 }
 0x8d7   : > { %v1539_v34 = vpop.xlane.xlu1 %1538 }
 0x8d8   : > { %v1550_v32 = vmul.f32 1.442695, %v1546_v31  ;;  %v1547_v36 = vsub.f32 %v1523_v2, %v1539_v34 }
 0x8d9   : > { %v1542_v35 = vpop.xlane.xlu0 %1541 }
 0x8da   : > { %v1548_v37 = vsub.f32 %v1528_v13, %v1542_v35  ;;  %3613 = vpow2.f32 %v1550_v32  ;;  %v1552_v42 = vmul.f32 1.442695, %v1547_v36  ;;  %v3477_v35 = vld [vmem:[%s4263_s14] sm:$0xff]   ;;  %v3478_v36 = vld [vmem:[%s4263_s14 + $0x8] sm:$0xff]  }
 0x8db   : > { %v1545_v38 = vpop.xlane.xlu1 %1544 }
 0x8dc   : > { %v1554_v39 = vmul.f32 1.442695, %v1548_v37  ;;  %v1549_v40 = vsub.f32 %v1531_v16, %v1545_v38  ;;  %v3479_v37 = vld [vmem:[%s4263_s14 + $0x10] sm:$0xff]   ;;  %v3480_v38 = vld [vmem:[%s4263_s14 + $0x18] sm:$0xff]  }
 0x8dd   : > { %v1206_v41 = vpop.xlane.xlu0 %1205 }
 0x8de   : > { %3615 = vpow2.f32 %v1554_v39  ;;  %v1556_v43 = vmul.f32 1.442695, %v1549_v40  ;;  %v3481_v39 = vld [vmem:[%s4263_s14 + $0x20] sm:$0xff]   ;;  %v3482_v40 = vld [vmem:[%s4263_s14 + $0x28] sm:$0xff]  }
 0x8df   : > { %3617 = vrcp.f32 %v1206_v41  ;;  %v1209_v45 = vpop.xlane.xlu1 %1208  ;;  %v3483_v41 = vld [vmem:[%s4263_s14 + $0x30] sm:$0xff]  }
 0x8e0   : > { %3619 = vpow2.f32 %v1556_v43 }
 0x8e1   : > { %3621 = vrcp.f32 %v1209_v45  ;;  %v1212_v17 = vpop.xlane.xlu0 %1211 }
 0x8e2   : > { %3623 = vpow2.f32 %v1552_v42 }
 0x8e3   : > { %v1215_v44 = vpop.xlane.xlu1 %1214 }
 0x8e4   : > { %v3614_v47 = vpop.eup %3613  ;;  %3625 = vrcp.f32 %v1215_v44 }
 0x8e5   : > { %v1558_v6 = vsel %vm944_vm0, %v3614_v47, 0.0  ;;  %3627 = vrcp.f32 %v1212_v17 }
 0x8e7   : > { %v1231_v1 = vpop.permute.xlu1 %1230 }
 0x8e8   : > { %v3616_v54 = vpop.eup %3615 }
 0x8e9   : > { %v3618_v57 = vpop.eup %3617  ;;  %v1564_v59 = vsel %vm944_vm0, %v3616_v54, 0.0 }
 0x8ea   : > { %v3620_v60 = vpop.eup %3619  ;;  %1565 = vadd.xlane.f32.xlu0 %v1564_v59  ;;  %v1220_v0 = vmul.f32 %v3618_v57, %v3606_v21 }
 0x8eb   : > { %v3622_v61 = vpop.eup %3621  ;;  %v1567_v62 = vsel %vm944_vm0, %v3620_v60, 0.0  ;;  %v1581_v18 = vpop.permute.xlu1 %1580 }
 0x8ec   : > { %v3624_v63 = vpop.eup %3623  ;;  %1568 = vadd.xlane.f32.xlu1 %v1567_v62  ;;  %v1221_v3 = vmul.f32 %v3622_v61, %v3608_v27 }
 0x8ed   : > { %v1561_v46 = vsel %vm944_vm0, %v3624_v63, 0.0 }
 0x8ee   : > { %1559 = vadd.xlane.f32.xlu0 %v1558_v6  ;;  %v1224_v10 = vpack.c.bf16 %v1221_v3, %v1220_v0  ;;  %v3626_v19 = vpop.eup %3625 }
 0x8f0   : > { %3265 = vmatprep.mubr.msk.bf16.mxu0 %vm944_vm0, %v1224_v10  ;;  %1562 = vadd.xlane.f32.xlu1 %v1561_v46 }
 0x901   : > { %1582 = vrot.lane.b32.xlu1 %v4404_v56, %s3979_s27  ;;  %v3628_v56 = vpop.eup %3627 }
 0x902   : > { %v1222_v21 = vmul.f32 %v3628_v56, %v4566_v11 }
 0x904   : > { %1228 = vrot.lane.b32.xlu0 %v4406_v58, %s3977_s7  ;;  %v1223_v58 = vmul.f32 %v3626_v19, %v4569_v29 }
 0x906   : > { %v1225_v27 = vpack.c.bf16 %v1223_v58, %v1222_v21 }
 0x977   : > { %v1566_v13 = vpop.xlane.xlu0 %1565 }
 0x979   : > { %v1569_v2 = vpop.xlane.xlu1 %1568 }
 0x97b   : > { %v1560_v14 = vpop.xlane.xlu0 %1559 }
 0x97c   : > { %3629 = vrcp.f32 %v1560_v14 }
 0x97d   : > { %3631 = vrcp.f32 %v1569_v2  ;;  %v1563_v16 = vpop.xlane.xlu1 %1562 }
 0x97e   : > { %3633 = vrcp.f32 %v1563_v16 }
 0x97f   : > { %3635 = vrcp.f32 %v1566_v13  ;;  %v1229_v20 = vpop.permute.xlu0 %1228 }
 0x980   : > { %3261 = vmatprep.subr.bf16.mxu0 %v1229_v20 }
 0x981   : > { %3262 = vmatpush3.bf16.msra.mxu0 %v1229_v20  ;;  %v1583_v30 = vpop.permute.xlu1 %1582 }
 0x982   : > { %3263 = vmatprep.subr.bf16.mxu0 %v1231_v1 }
 0x985   : > { %3264 = vmatpush3.bf16.msra.mxu0 %v1231_v1 }
 0x986   : > { %v3630_v5 = vpop.eup %3629  ;;  %3293 = vmatprep.subr.bf16.mxu0 %v1581_v18 }
 0x987   : > { %v3632_v9 = vpop.eup %3631  ;;  %v1574_v25 = vmul.f32 %v3630_v5, %v3614_v47  ;;  %v3484_v47 = vld [vmem:[%s4263_s14 + $0x38] sm:$0xff]  }
 0x988   : > { %v3634_v28 = vpop.eup %3633  ;;  %3266 = vmatmul.mubr.msk.bf16.vlgmr.msra.gmra.mrb[12].mxu0 %vm944_vm0, %v1225_v27  ;;  %v1577_v29 = vmul.f32 %v3632_v9, %v3620_v60 }
 0x989   : > { %v3636_v15 = vpop.eup %3635  ;;  %3294 = vmatpush3.bf16.msra.mxu0 %v1581_v18  ;;  %v1575_v31 = vmul.f32 %v3634_v28, %v3624_v63 }
 0x98a   : > { %3295 = vmatprep.subr.bf16.mxu0 %v1583_v30  ;;  %v1576_v34 = vmul.f32 %v3636_v15, %v3616_v54 }
 0x98b   : > { %v1578_v11 = vpack.c.bf16 %v1575_v31, %v1574_v25  ;;  %v1723_v25 = vsub.s32 4, %v4367_v4 }
 0x98c   : > { %v1579_v32 = vpack.c.bf16 %v1577_v29, %v1576_v34 }
 0x98d   : > { %3296 = vmatpush3.bf16.msra.mxu0 %v1583_v30  ;;  %3297 = vmatprep.mubr.msk.bf16.mxu0 %vm944_vm0, %v1578_v11  ;;  %v1724_v31 = vrot.slane %v4373_v8, %v1723_v25  ;;  %v3711_v8 = vld [vmem:[#allocation2 + $0x10] sm:$0xff]  ;;  %v3526_v25 = vld [vmem:[%s4269_s25 + $0xcc] ss:$16 sps:$4 sm:$0xff]  }
 0x98e   : > { %3301 = vmatprep.subr.bf16.mxu0 %v3477_v35 }
 0x990   : > { %3298 = vmatmul.mubr.msk.bf16.vlgmr.msra.gmra.mrb[16].mxu0 %vm944_vm0, %v1579_v32 }
 0x991   : > { %3302 = vmatpush3.bf16.msra.mxu0 %v3477_v35 }
 0x992   : > { %3303 = vmatprep.subr.bf16.mxu0 %v3478_v36 }
 0x995   : > { %3304 = vmatpush3.bf16.msra.mxu0 %v3478_v36 }
 0x996   : > { %3305 = vmatprep.subr.bf16.mxu0 %v3479_v37 }
 0x999   : > { %3306 = vmatpush3.bf16.msra.mxu0 %v3479_v37  ;;  %v3709_v37 = vld [vmem:[#allocation2] sm:$0xff] }
 0x99a   : > { %3307 = vmatprep.subr.bf16.mxu0 %v3480_v38 }
 0x99d   : > { %3308 = vmatpush3.bf16.msra.mxu0 %v3480_v38 }
 0x99e   : > { %3309 = vmatprep.subr.bf16.mxu0 %v3481_v39 }
 0x9a1   : > { %3310 = vmatpush3.bf16.msra.mxu0 %v3481_v39 }
 0x9a2   : > { %3311 = vmatprep.subr.bf16.mxu0 %v3482_v40 }
 0x9a5   : > { %3312 = vmatpush3.bf16.msra.mxu0 %v3482_v40  ;;  %v3710_v40 = vld [vmem:[#allocation2 + $0x8] sm:$0xff] }
 0x9a6   : > { %3313 = vmatprep.subr.bf16.mxu0 %v3483_v41 }
 0x9a9   : > { %3314 = vmatpush3.bf16.msra.mxu0 %v3483_v41 }
 0x9aa   : > { %3315 = vmatprep.subr.bf16.mxu0 %v3484_v47 }
 0x9ad   : > { %3316 = vmatpush3.bf16.msra.mxu0 %v3484_v47 }
 0xa5b   : > { %v3267_v42 = vpop.f32.mrb[12].mxu0 }
 0xa5c   : > { %v1274_v43 = vpop.f32.mrb[13].mxu0 }
 0xa5d   : > { %v3268_v45 = vpop.f32.mrb[14].mxu0 }
 0xa5e   : > { %v3420_v54 = vpack.i.bf16 %v3268_v45, %v3267_v42  ;;  %v1277_v57 = vpop.f32.mrb[15].mxu0  ;;  %v3712_v45 = vld [vmem:[#allocation2 + $0x18] sm:$0xff] }
 0xa5f   : > { %v3415_v59 = vpack.i.bf16 %v1277_v57, %v1274_v43  ;;  %v3487_v57 = vld [vmem:[%s4269_s25 + $0x4] ss:$16 sps:$4 sm:$0xff]  }
 0xa60   : > { %3421 = vrot.lane.b32.xlu1 %v3420_v54, %s3979_s27  ;;  %v3485_v54 = vld [vmem:[%s4269_s25] ss:$16 sps:$4 sm:$0xff]   ;;  %2102 = vmatprep.subr.bf16.mxu1 %v3487_v57 }
 0xa61   : > { %3416 = vrot.lane.b32.xlu0 %v3415_v59, %s3979_s27  ;;  %v3488_v59 = vld [vmem:[%s4269_s25 + $0x8] ss:$16 sps:$4 sm:$0xff]   ;;  %2103 = vmatpush1.bf16.msra.mxu1 %v3485_v54 }
 0xa63   : > { %v3299_v60 = vpop.f32.mrb[16].mxu0 }
 0xa64   : > { %3431 = vrot.lane.b32.xlu1 %v3430_v52, %s3978_s30  ;;  %v1626_v61 = vpop.f32.mrb[17].mxu0 }
 0xa65   : > { %3426 = vrot.lane.b32.xlu0 %v3425_v55, %s3978_s30  ;;  %v3300_v62 = vpop.f32.mrb[18].mxu0 }
 0xa66   : > { %v3440_v63 = vpack.i.bf16 %v3300_v62, %v3299_v60  ;;  %v1629_v0 = vpop.f32.mrb[19].mxu0  ;;  %v3490_v60 = vld [vmem:[%s4269_s25 + $0xc] ss:$16 sps:$4 sm:$0xff]  }
 0xa67   : > { %v3435_v3 = vpack.i.bf16 %v1629_v0, %v1626_v61  ;;  %v3493_v61 = vld [vmem:[%s4269_s25 + $0x24] ss:$16 sps:$4 sm:$0xff]   ;;  %v3496_v62 = vld [vmem:[%s4269_s25 + $0x2c] ss:$16 sps:$4 sm:$0xff]   ;;  %2155 = vmatprep.subr.bf16.mxu0 %v3490_v60  ;;  %v3494_v0 = vld [vmem:[%s4269_s25 + $0x28] ss:$16 sps:$4 sm:$0xff]  }
 0xa68   : > { %3441 = vrot.lane.b32.xlu1 %v3440_v63, %s3977_s7  ;;  %v3491_v63 = vld [vmem:[%s4269_s25 + $0x20] ss:$16 sps:$4 sm:$0xff]   ;;  %2104 = vmatprep.subr.bf16.mxu1 %v3493_v61 }
 0xa69   : > { %3436 = vrot.lane.b32.xlu0 %v3435_v3, %s3977_s7  ;;  %2105 = vmatpush1.bf16.msra.mxu1 %v3491_v63 }
 0xad2   : > { %v3422_v6 = vpop.permute.xlu1 %3421 }
 0xad3   : > { %v3417_v10 = vpop.permute.xlu0 %3416  ;;  %v3424_v46 = vunpack.i.h.bf16 %v3422_v6  ;;  %v3423_v44 = vunpack.i.l.bf16 %v3422_v6 }
 0xad4   : > { %v3419_v50 = vunpack.i.h.bf16 %v3417_v10  ;;  %v3418_v52 = vunpack.i.l.bf16 %v3417_v10 }
 0xad5   : > { %v1692_v55 = vsel %vm944_vm0, %v4488_v24, %v3424_v46  ;;  %v1691_v13 = vsel %vm944_vm0, %v4484_v22, %v3423_v44 }
 0xad6   : > { %v3432_v48 = vpop.permute.xlu1 %3431  ;;  %v1690_v14 = vsel %vm944_vm0, %v4490_v26, %v3419_v50  ;;  %v1689_v16 = vsel %vm944_vm0, %v4486_v23, %v3418_v52 }
 0xad7   : > { %v3427_v1 = vpop.permute.xlu0 %3426  ;;  %v3434_v17 = vunpack.i.h.bf16 %v3432_v48  ;;  %v3433_v18 = vunpack.i.l.bf16 %v3432_v48 }
 0xad8   : > { %v3429_v49 = vunpack.i.h.bf16 %v3427_v1  ;;  %v3428_v53 = vunpack.i.l.bf16 %v3427_v1 }
 0xad9   : > { %v1696_v58 = vsel %vm1693_vm1, %v1691_v13, %v3433_v18  ;;  %v1697_v21 = vsel %vm1693_vm1, %v1692_v55, %v3434_v17 }
 0xada   : > { %v3442_v2 = vpop.permute.xlu1 %3441  ;;  %v1694_v27 = vsel %vm1693_vm1, %v1689_v16, %v3428_v53  ;;  %v1695_v22 = vsel %vm1693_vm1, %v1690_v14, %v3429_v49  ;;  %v3499_v14 = vld [vmem:[%s4269_s25 + $0x44] ss:$16 sps:$4 sm:$0xff]   ;;  %v3502_v16 = vld [vmem:[%s4269_s25 + $0x4c] ss:$16 sps:$4 sm:$0xff]  }
 0xadb   : > { %v3444_v19 = vunpack.i.h.bf16 %v3442_v2  ;;  %v3443_v20 = vunpack.i.l.bf16 %v3442_v2  ;;  %v3437_v56 = vpop.permute.xlu0 %3436  ;;  %2106 = vmatprep.subr.bf16.mxu1 %v3499_v14 }
 0xadc   : > { %v3439_v5 = vunpack.i.h.bf16 %v3437_v56  ;;  %v3438_v24 = vunpack.i.l.bf16 %v3437_v56  ;;  %v3505_v56 = vld [vmem:[%s4269_s25 + $0x64] ss:$16 sps:$4 sm:$0xff]  }
 0xadd   : > { %v1702_v9 = vsel %vm1698_vm2, %v1697_v21, %v3444_v19  ;;  %v1701_v26 = vsel %vm1698_vm2, %v1696_v58, %v3443_v20  ;;  %v3497_v19 = vld [vmem:[%s4269_s25 + $0x40] ss:$16 sps:$4 sm:$0xff]   ;;  %v3500_v20 = vld [vmem:[%s4269_s25 + $0x48] ss:$16 sps:$4 sm:$0xff]   ;;  %v3508_v58 = vld [vmem:[%s4269_s25 + $0x6c] ss:$16 sps:$4 sm:$0xff]  }
 0xade   : > { %v1704_v28 = vpack.c.bf16 %v1702_v9, %v1701_v26  ;;  %v1699_v23 = vsel %vm1698_vm2, %v1694_v27, %v3438_v24  ;;  %v1700_v15 = vsel %vm1698_vm2, %v1695_v22, %v3439_v5  ;;  %2107 = vmatpush1.bf16.msra.mxu1 %v3497_v19  ;;  %v3503_v21 = vld [vmem:[%s4269_s25 + $0x60] ss:$16 sps:$4 sm:$0xff]   ;;  %v3506_v5 = vld [vmem:[%s4269_s25 + $0x68] ss:$16 sps:$4 sm:$0xff]   ;;  %v3511_v24 = vld [vmem:[%s4269_s25 + $0x84] ss:$16 sps:$4 sm:$0xff]  }
 0xadf   : > { %v1703_v30 = vpack.c.bf16 %v1700_v15, %v1699_v23  ;;  %2108 = vmatprep.subr.bf16.mxu1 %v3505_v56  ;;  %v3514_v27 = vld [vmem:[%s4269_s25 + $0x8c] ss:$16 sps:$4 sm:$0xff]   ;;  %v3509_v22 = vld [vmem:[%s4269_s25 + $0x80] ss:$16 sps:$4 sm:$0xff]   ;;  %v3512_v9 = vld [vmem:[%s4269_s25 + $0x88] ss:$16 sps:$4 sm:$0xff]  }
 0xae0   : > { %v3517_v26 = vld [vmem:[%s4269_s25 + $0xa4] ss:$16 sps:$4 sm:$0xff]   ;;  %v3515_v23 = vld [vmem:[%s4269_s25 + $0xa0] ss:$16 sps:$4 sm:$0xff]   ;;  %v3518_v15 = vld [vmem:[%s4269_s25 + $0xa8] ss:$16 sps:$4 sm:$0xff]  }
 0xae1   : > { %3317 = vmatprep.mubr.bf16.mxu0 %v1703_v30  ;;  %v3523_v30 = vld [vmem:[%s4269_s25 + $0xc4] ss:$16 sps:$4 sm:$0xff]  }
 0xae2   : > { %3318 = vmatmul.mubr.bf16.vlgmr.msra.gmra.mrb[20].mxu0 %v1704_v28  ;;  %2109 = vmatpush1.bf16.msra.mxu1 %v3503_v21  ;;  %v3520_v28 = vld [vmem:[%s4269_s25 + $0xac] ss:$16 sps:$4 sm:$0xff]   ;;  %v3533_v56 = vld [vmem:[%s4271_s24 + $0x40] sm:$0xff]  }
 0xae3   : > { %2187 = vmatprep.mubr.bf16.mxu0 %v3976_v51  ;;  %2156 = vmatpush1.bf16.msra.mxu0 %v3488_v59  ;;  %v3536_v21 = vld [vmem:[%s4271_s24 + $0x80] sm:$0xff]  }
 0xae4   : > { %2157 = vmatprep.subr.bf16.mxu0 %v3496_v62  ;;  %2110 = vmatprep.subr.bf16.mxu1 %v3511_v24  ;;  %v4697_v62 = vld [vmem:[%s4282_s0] sm:$0x3f]  ;;  %v3539_v24 = vld [vmem:[%s4271_s24 + $0x8] sm:$0xff]  }
 0xae5   : > { %v1873_v63 = vrot.slane %v4697_v62, %v4390_v33 }
 0xae6   : > { %2111 = vmatpush1.bf16.msra.mxu1 %v3509_v22  ;;  %v3541_v22 = vld [vmem:[%s4271_s24 + $0x50] sm:$0xff]  }
 0xae7   : > { %2158 = vmatpush1.bf16.msra.mxu0 %v3494_v0  ;;  %2112 = vmatprep.subr.bf16.mxu1 %v3517_v26  ;;  %v1880_v0 = vsub.s32 3, %v4367_v4  ;;  %v3543_v26 = vld [vmem:[%s4271_s24 + $0x10] sm:$0xff]  }
 0xae8   : > { %2159 = vmatprep.subr.bf16.mxu0 %v3502_v16 }
 0xaea   : > { %2113 = vmatpush1.bf16.msra.mxu1 %v3515_v23  ;;  %v3545_v23 = vld [vmem:[%s4271_s24 + $0x58] sm:$0xff]  }
 0xaeb   : > { %2160 = vmatpush1.bf16.msra.mxu0 %v3500_v20  ;;  %2114 = vmatprep.subr.bf16.mxu1 %v3523_v30  ;;  %v3547_v30 = vld [vmem:[%s4271_s24 + $0x18] sm:$0xff]  }
 0xaec   : > { %2161 = vmatprep.subr.bf16.mxu0 %v3508_v58  ;;  %v3535_v58 = vld [vmem:[%s4271_s24] sm:$0xff]  }
 0xaef   : > { %2162 = vmatpush1.bf16.msra.mxu0 %v3506_v5  ;;  %v3538_v5 = vld [vmem:[%s4271_s24 + $0xc8] sm:$0xff]  }
 0xaf0   : > { %2163 = vmatprep.subr.bf16.mxu0 %v3514_v27  ;;  %v3540_v27 = vld [vmem:[%s4271_s24 + $0x88] sm:$0xff]  }
 0xaf3   : > { %2164 = vmatpush1.bf16.msra.mxu0 %v3512_v9  ;;  %v3542_v9 = vld [vmem:[%s4271_s24 + $0xd0] sm:$0xff]  }
 0xaf4   : > { %2165 = vmatprep.subr.bf16.mxu0 %v3520_v28  ;;  %v3544_v28 = vld [vmem:[%s4271_s24 + $0x90] sm:$0xff]  }
 0xaf7   : > { %2166 = vmatpush1.bf16.msra.mxu0 %v3518_v15  ;;  %v3546_v15 = vld [vmem:[%s4271_s24 + $0xd8] sm:$0xff]  }
 0xaf8   : > { %2167 = vmatprep.subr.bf16.mxu0 %v3526_v25  ;;  %v3548_v25 = vld [vmem:[%s4271_s24 + $0x98] sm:$0xff]  }
 0xbb5   : > { %v3319_v29 = vpop.f32.mrb[20].mxu0 }
 0xbb6   : > { %v1807_v11 = vpop.f32.mrb[21].mxu0  ;;  %v1816_v36 = vadd.f32 %v3319_v29, %v1724_v31  ;;  %v3524_v29 = vld [vmem:[%s4269_s25 + $0xc8] ss:$16 sps:$4 sm:$0xff]  }
 0xbb7   : > { %v1808_v34 = vadd.f32 %v1807_v11, %v1724_v31  ;;  %v3320_v32 = vpop.f32.mrb[22].mxu0  ;;  %v3529_v11 = vld [vmem:[%s4269_s25 + $0xe4] ss:$16 sps:$4 sm:$0xff]   ;;  %2168 = vmatpush1.bf16.msra.mxu0 %v3524_v29 }
 0xbb8   : > { %v1810_v35 = vpop.f32.mrb[23].mxu0  ;;  %v4637_v42 = vadd.f32 %v3711_v8, %v1816_v36  ;;  %v1819_v43 = vadd.f32 %v3320_v32, %v1724_v31  ;;  %v3527_v32 = vld [vmem:[%s4269_s25 + $0xe0] ss:$16 sps:$4 sm:$0xff]  }
 0xbb9   : > { %v4632_v38 = vadd.f32 %v3709_v37, %v1808_v34  ;;  %v1811_v39 = vadd.f32 %v1810_v35, %v1724_v31  ;;  %v3521_v31 = vld [vmem:[%s4269_s25 + $0xc0] ss:$16 sps:$4 sm:$0xff]   ;;  %v3532_v34 = vld [vmem:[%s4269_s25 + $0xec] ss:$16 sps:$4 sm:$0xff]   ;;  %v3530_v35 = vld [vmem:[%s4269_s25 + $0xe8] ss:$16 sps:$4 sm:$0xff]  }
 0xbba   : > { %v4641_v47 = vadd.f32 %v3712_v45, %v1819_v43  ;;  %2115 = vmatpush1.bf16.msra.mxu1 %v3521_v31  ;;  %2169 = vmatprep.subr.bf16.mxu0 %v3532_v34  ;;  %v3549_v31 = vld [vmem:[%s4271_s24 + $0x60] sm:$0xff]  }
 0xbbb   : > { %v4634_v41 = vadd.f32 %v3710_v40, %v1811_v39  ;;  %1826 = vadd.xlane.f32.xlu0 %v4632_v38  ;;  %2116 = vmatprep.subr.bf16.mxu1 %v3529_v11  ;;  %v3550_v29 = vld [vmem:[%s4271_s24 + $0xe0] sm:$0xff]  }
 0xbbc   : > { %2170 = vmatpush1.bf16.msra.mxu0 %v3530_v35  ;;  %v3551_v11 = vld [vmem:[%s4271_s24 + $0x20] sm:$0xff]   ;;  %v3554_v35 = vld [vmem:[%s4271_s24 + $0xe8] sm:$0xff]  }
 0xbbd   : > { %1828 = vadd.xlane.f32.xlu1 %v4634_v41  ;;  %v3552_v34 = vld [vmem:[%s4271_s24 + $0xa0] sm:$0xff]  }
 0xbbe   : > { %2117 = vmatpush1.bf16.msra.mxu1 %v3527_v32  ;;  %v3553_v32 = vld [vmem:[%s4271_s24 + $0x68] sm:$0xff]  }
 0xbbf   : > { %1830 = vadd.xlane.f32.xlu0 %v4637_v42  ;;  %3161 = vmatprep.subr.bf16.mxu1 %v3533_v56 }
 0xbc3   : > { %1832 = vadd.xlane.f32.xlu0 %v4641_v47 }
 0xc48   : > { %v1827_v3 = vpop.xlane.xlu0 %1826 }
 0xc49   : > { %v1834_v6 = vmul.f32 0.0078125, %v1827_v3 }
 0xc4a   : > { %v1829_v10 = vpop.xlane.xlu1 %1828 }
 0xc4b   : > { %v4653_v46 = vsub.f32 %v4632_v38, %v1834_v6  ;;  %v1835_v44 = vmul.f32 0.0078125, %v1829_v10 }
 0xc4c   : > { %v1831_v48 = vpop.xlane.xlu0 %1830 }
 0xc4d   : > { %v4656_v50 = vsub.f32 %v4634_v41, %v1835_v44  ;;  %v1836_v52 = vmul.f32 0.0078125, %v1831_v48  ;;  %v1842_v1 = vmul.f32 %v4653_v46, %v4653_v46 }
 0xc4f   : > { %v4661_v17 = vsub.f32 %v4637_v42, %v1836_v52  ;;  %1846 = vadd.xlane.f32.xlu0 %v1842_v1  ;;  %v1843_v18 = vmul.f32 %v4656_v50, %v4656_v50  ;;  %v1881_v52 = vrot.slane %v4697_v62, %v1880_v0 }
 0xc50   : > { %v1833_v49 = vpop.xlane.xlu0 %1832 }
 0xc51   : > { %v1837_v53 = vmul.f32 0.0078125, %v1833_v49  ;;  %1848 = vadd.xlane.f32.xlu1 %v1843_v18  ;;  %v1844_v55 = vmul.f32 %v4661_v17, %v4661_v17 }
 0xc53   : > { %v4668_v13 = vsub.f32 %v4641_v47, %v1837_v53  ;;  %1850 = vadd.xlane.f32.xlu0 %v1844_v55 }
 0xc55   : > { %v1845_v2 = vmul.f32 %v4668_v13, %v4668_v13 }
 0xc57   : > { %1852 = vadd.xlane.f32.xlu1 %v1845_v2 }
 0xcdc   : > { %v1847_v36 = vpop.xlane.xlu0 %1846 }
 0xcdd   : > { %v1854_v37 = vmul.f32 0.0078125, %v1847_v36  ;;  %v3555_v36 = vld [vmem:[%s4271_s24 + $0x28] sm:$0xff]  }
 0xcde   : > { %v1849_v39 = vpop.xlane.xlu1 %1848 }
 0xcdf   : > { %v1858_v40 = vadd.f32 1e-05, %v1854_v37  ;;  %v1855_v8 = vmul.f32 0.0078125, %v1849_v39  ;;  %v3556_v37 = vld [vmem:[%s4271_s24 + $0xa8] sm:$0xff]   ;;  %v3557_v39 = vld [vmem:[%s4271_s24 + $0x70] sm:$0xff]  }
 0xce0   : > { %v1851_v43 = vpop.xlane.xlu0 %1850 }
 0xce1   : > { %3637 = vrsqrt.f32 %v1858_v40  ;;  %v1859_v45 = vadd.f32 1e-05, %v1855_v8  ;;  %v1856_v54 = vmul.f32 0.0078125, %v1851_v43  ;;  %v3558_v40 = vld [vmem:[%s4271_s24 + $0xf0] sm:$0xff]  }
 0xce2   : > { %v3559_v8 = vld [vmem:[%s4271_s24 + $0x30] sm:$0xff]  }
 0xce3   : > { %3639 = vrsqrt.f32 %v1859_v45  ;;  %v1860_v57 = vadd.f32 1e-05, %v1856_v54  ;;  %v3560_v43 = vld [vmem:[%s4271_s24 + $0xb0] sm:$0xff]   ;;  %v3561_v45 = vld [vmem:[%s4271_s24 + $0x78] sm:$0xff]  }
 0xce4   : > { %v1853_v59 = vpop.xlane.xlu1 %1852  ;;  %v3562_v54 = vld [vmem:[%s4271_s24 + $0xf8] sm:$0xff]  }
 0xce5   : > { %3641 = vrsqrt.f32 %v1860_v57  ;;  %v1857_v60 = vmul.f32 0.0078125, %v1853_v59  ;;  %v3563_v57 = vld [vmem:[%s4271_s24 + $0x38] sm:$0xff]  }
 0xce6   : > { %v3564_v59 = vld [vmem:[%s4271_s24 + $0xb8] sm:$0xff]  }
 0xce7   : > { %v1861_v61 = vadd.f32 1e-05, %v1857_v60  ;;  %v1920_v60 = vld [vmem:[%s4292_s18] sm:$0xf] }
 0xce9   : > { %3643 = vrsqrt.f32 %v1861_v61  ;;  %v1925_v61 = vrot.slane %v1920_v60, %v4370_v7 }
 0xceb   : > { %v3638_v3 = vpop.eup %3637 }
 0xcec   : > { %v1866_v6 = vmul.f32 %v3638_v3, %v4653_v46  ;;  %v4749_v3 = vrot.slane %v1920_v60, %v4379_v12 }
 0xced   : > { %v3640_v10 = vpop.eup %3639 }
 0xcee   : > { %v1867_v44 = vmul.f32 %v3640_v10, %v4656_v50  ;;  %v1874_v48 = vmul.f32 %v1873_v63, %v1866_v6  ;;  %v4753_v6 = vrot.slane %v1920_v60, %v1880_v0 }
 0xcef   : > { %v3642_v1 = vpop.eup %3641 }
 0xcf0   : > { %v1875_v18 = vmul.f32 %v1873_v63, %v1867_v44  ;;  %v1882_v49 = vadd.f32 %v1881_v52, %v1874_v48  ;;  %v1868_v55 = vmul.f32 %v3642_v1, %v4661_v17 }
 0xcf2   : > { %v1883_v53 = vadd.f32 %v1881_v52, %v1875_v18  ;;  %v1876_v50 = vmul.f32 %v1873_v63, %v1868_v55 }
 0xcf3   : > { %v3644_v2 = vpop.eup %3643 }
 0xcf4   : > { %v1886_v14 = vpack.c.bf16 %v1883_v53, %v1882_v49  ;;  %v1869_v46 = vmul.f32 %v3644_v2, %v4668_v13  ;;  %v1884_v17 = vadd.f32 %v1881_v52, %v1876_v50  ;;  %v3534_v13 = vld [vmem:[%s4271_s24 + $0xc0] sm:$0xff]  }
 0xcf5   : > { %3189 = vmatprep.subr.bf16.mxu0 %v3534_v13 }
 0xcf6   : > { %2135 = vmatmul.mubr.bf16.vlgmr.msra.gmra.mrb[24].mxu1 %v1886_v14  ;;  %2188 = vmatmul.mubr.bf16.vlgmr.msra.gmra.mrb[24].mxu0 %v1886_v14  ;;  %v1877_v16 = vmul.f32 %v1873_v63, %v1869_v46  ;;  %v4746_v63 = vrot.slane %v1920_v60, %v4390_v33 }
 0xcf7   : > { %2144 = vmatprep.mubr.bf16.mxu1 %v3976_v51  ;;  %2197 = vmatprep.mubr.bf16.mxu0 %v3976_v51  ;;  %v3537_v51 = vld [vmem:[%s4271_s24 + $0x48] sm:$0xff]  }
 0xcf8   : > { %v1885_v19 = vadd.f32 %v1881_v52, %v1877_v16  ;;  %3162 = vmatpush3.bf16.msra.mxu1 %v3535_v58  ;;  %3190 = vmatpush3.bf16.msra.mxu0 %v3536_v21 }
 0xcf9   : > { %3163 = vmatprep.subr.bf16.mxu1 %v3537_v51  ;;  %3191 = vmatprep.subr.bf16.mxu0 %v3538_v5 }
 0xcfa   : > { %v1887_v20 = vpack.c.bf16 %v1885_v19, %v1884_v17 }
 0xcfc   : > { %3164 = vmatpush3.bf16.msra.mxu1 %v3539_v24  ;;  %3192 = vmatpush3.bf16.msra.mxu0 %v3540_v27 }
 0xcfd   : > { %3165 = vmatprep.subr.bf16.mxu1 %v3541_v22  ;;  %3193 = vmatprep.subr.bf16.mxu0 %v3542_v9 }
 0xcfe   : > { %2145 = vmatmul.mubr.bf16.gmra.mrb[28].mxu1 %v1887_v20  ;;  %2198 = vmatmul.mubr.bf16.gmra.mrb[28].mxu0 %v1887_v20 }
 0xd00   : > { %3166 = vmatpush3.bf16.msra.mxu1 %v3543_v26  ;;  %3194 = vmatpush3.bf16.msra.mxu0 %v3544_v28 }
 0xd01   : > { %3167 = vmatprep.subr.bf16.mxu1 %v3545_v23  ;;  %3195 = vmatprep.subr.bf16.mxu0 %v3546_v15 }
 0xd04   : > { %3168 = vmatpush3.bf16.msra.mxu1 %v3547_v30  ;;  %3196 = vmatpush3.bf16.msra.mxu0 %v3548_v25 }
 0xd05   : > { %3169 = vmatprep.subr.bf16.mxu1 %v3549_v31  ;;  %3197 = vmatprep.subr.bf16.mxu0 %v3550_v29 }
 0xd08   : > { %3170 = vmatpush3.bf16.msra.mxu1 %v3551_v11  ;;  %3198 = vmatpush3.bf16.msra.mxu0 %v3552_v34 }
 0xd09   : > { %3171 = vmatprep.subr.bf16.mxu1 %v3553_v32  ;;  %3199 = vmatprep.subr.bf16.mxu0 %v3554_v35 }
 0xd0c   : > { %3172 = vmatpush3.bf16.msra.mxu1 %v3555_v36  ;;  %3200 = vmatpush3.bf16.msra.mxu0 %v3556_v37 }
 0xd0d   : > { %3173 = vmatprep.subr.bf16.mxu1 %v3557_v39  ;;  %3201 = vmatprep.subr.bf16.mxu0 %v3558_v40 }
 0xd10   : > { %3174 = vmatpush3.bf16.msra.mxu1 %v3559_v8  ;;  %3202 = vmatpush3.bf16.msra.mxu0 %v3560_v43 }
 0xd11   : > { %3175 = vmatprep.subr.bf16.mxu1 %v3561_v45  ;;  %3203 = vmatprep.subr.bf16.mxu0 %v3562_v54 }
 0xd14   : > { %3176 = vmatpush3.bf16.msra.mxu1 %v3563_v57  ;;  %3204 = vmatpush3.bf16.msra.mxu0 %v3564_v59 }
 0xdc9   : > { %v2136_v10 = vpop.f32.mrb[24].mxu1  ;;  %v2189_v44 = vpop.f32.mrb[24].mxu0 }
 0xdca   : > { %v4755_v48 = vadd.f32 %v2136_v10, %v1925_v61  ;;  %v4758_v52 = vadd.f32 %v2189_v44, %v4746_v63  ;;  %v2138_v1 = vpop.f32.mrb[25].mxu1  ;;  %v2191_v18 = vpop.f32.mrb[25].mxu0 }
 0xdcb   : > { %v4761_v49 = vadd.f32 %v2138_v1, %v4749_v3  ;;  %v4764_v33 = vadd.f32 %v2191_v18, %v4753_v6  ;;  %v2140_v53 = vpop.f32.mrb[26].mxu1  ;;  %v2193_v55 = vpop.f32.mrb[26].mxu0 }
 0xdcc   : > { %v3053_v0 = vmul.f32 -1.702, %v4755_v48  ;;  %v3055_v2 = vmul.f32 -1.702, %v4758_v52  ;;  %v4768_v14 = vadd.f32 %v2140_v53, %v1925_v61  ;;  %v4771_v46 = vadd.f32 %v2193_v55, %v4746_v63  ;;  %v2142_v50 = vpop.f32.mrb[27].mxu1  ;;  %v2195_v16 = vpop.f32.mrb[27].mxu0 }
 0xdcd   : > { %v3054_v19 = vmul.f32 -1.702, %v4761_v49  ;;  %v3056_v17 = vmul.f32 -1.702, %v4764_v33  ;;  %v4776_v20 = vadd.f32 %v2142_v50, %v4749_v3  ;;  %v4779_v56 = vadd.f32 %v2195_v16, %v4753_v6 }
 0xdce   : > { %v2240_v13 = vmul.f32 1.442695, %v3053_v0  ;;  %v2244_v58 = vmul.f32 1.442695, %v3055_v2  ;;  %v3057_v21 = vmul.f32 -1.702, %v4768_v14 }
 0xdcf   : > { %v2242_v51 = vmul.f32 1.442695, %v3054_v19  ;;  %v2246_v5 = vmul.f32 1.442695, %v3056_v17  ;;  %v3059_v24 = vmul.f32 -1.702, %v4771_v46 }
 0xdd0   : > { %3645 = vpow2.f32 %v2240_v13  ;;  %v2248_v27 = vmul.f32 1.442695, %v3057_v21  ;;  %v3058_v22 = vmul.f32 -1.702, %v4776_v20  ;;  %v3060_v9 = vmul.f32 -1.702, %v4779_v56 }
 0xdd1   : > { %3647 = vpow2.f32 %v2244_v58  ;;  %v2252_v26 = vmul.f32 1.442695, %v3059_v24  ;;  %v2146_v28 = vpop.f32.mrb[28].mxu1  ;;  %v2199_v23 = vpop.f32.mrb[28].mxu0 }
 0xdd2   : > { %3649 = vpow2.f32 %v2242_v51  ;;  %v2250_v15 = vmul.f32 1.442695, %v3058_v22  ;;  %v4785_v30 = vadd.f32 %v2146_v28, %v1925_v61  ;;  %v2148_v25 = vpop.f32.mrb[29].mxu1  ;;  %v2201_v31 = vpop.f32.mrb[29].mxu0  ;;  %v2254_v29 = vmul.f32 1.442695, %v3060_v9 }
 0xdd3   : > { %3651 = vpow2.f32 %v2246_v5  ;;  %v4788_v11 = vadd.f32 %v2199_v23, %v4746_v63  ;;  %v4791_v34 = vadd.f32 %v2148_v25, %v4749_v3  ;;  %v2150_v32 = vpop.f32.mrb[30].mxu1  ;;  %v2203_v35 = vpop.f32.mrb[30].mxu0  ;;  %v4800_v10 = vadd.f32 %v2201_v31, %v4753_v6 }
 0xdd4   : > { %3653 = vpow2.f32 %v2248_v27  ;;  %v3061_v36 = vmul.f32 -1.702, %v4785_v30  ;;  %v4794_v37 = vadd.f32 %v2150_v32, %v1925_v61  ;;  %v2152_v39 = vpop.f32.mrb[31].mxu1  ;;  %v2205_v40 = vpop.f32.mrb[31].mxu0  ;;  %v4804_v19 = vadd.f32 %v2203_v35, %v4746_v63 }
 0xdd5   : > { %3655 = vpow2.f32 %v2252_v26  ;;  %v3063_v8 = vmul.f32 -1.702, %v4788_v11  ;;  %v3062_v43 = vmul.f32 -1.702, %v4791_v34  ;;  %v3064_v2 = vmul.f32 -1.702, %v4800_v10 }
 0xdd6   : > { %3657 = vpow2.f32 %v2250_v15  ;;  %v2256_v45 = vmul.f32 1.442695, %v3061_v36  ;;  %v3065_v54 = vmul.f32 -1.702, %v4794_v37  ;;  %v4807_v58 = vadd.f32 %v2152_v39, %v4749_v3 }
 0xdd7   : > { %3659 = vpow2.f32 %v2254_v29  ;;  %v2260_v57 = vmul.f32 1.442695, %v3063_v8  ;;  %v2258_v59 = vmul.f32 1.442695, %v3062_v43  ;;  %v4810_v5 = vadd.f32 %v2205_v40, %v4753_v6 }
 0xdd8   : > { %3661 = vpow2.f32 %v2256_v45  ;;  %v2264_v60 = vmul.f32 1.442695, %v3065_v54  ;;  %v2262_v22 = vmul.f32 1.442695, %v3064_v2  ;;  %v3067_v26 = vmul.f32 -1.702, %v4804_v19 }
 0xdd9   : > { %3663 = vpow2.f32 %v2260_v57  ;;  %v3066_v3 = vmul.f32 -1.702, %v4807_v58  ;;  %v3068_v15 = vmul.f32 -1.702, %v4810_v5 }
 0xdda   : > { %v3646_v61 = vpop.eup %3645  ;;  %3665 = vpow2.f32 %v2258_v59  ;;  %v2268_v31 = vmul.f32 1.442695, %v3067_v26 }
 0xddb   : > { %v3648_v44 = vpop.eup %3647  ;;  %v2272_v1 = vadd.f32 1.0, %v3646_v61  ;;  %3667 = vpow2.f32 %v2264_v60  ;;  %v2266_v35 = vmul.f32 1.442695, %v3066_v3  ;;  %v2270_v39 = vmul.f32 1.442695, %v3068_v15 }
 0xddc   : > { %v3650_v18 = vpop.eup %3649  ;;  %v2274_v53 = vadd.f32 1.0, %v3648_v44 }
 0xddd   : > { %v3652_v55 = vpop.eup %3651  ;;  %3669 = vrcp.f32 %v2272_v1  ;;  %v2273_v0 = vadd.f32 1.0, %v3650_v18 }
 0xdde   : > { %v3654_v50 = vpop.eup %3653  ;;  %3671 = vrcp.f32 %v2274_v53  ;;  %v2275_v16 = vadd.f32 1.0, %v3652_v55 }
 0xddf   : > { %v3656_v17 = vpop.eup %3655  ;;  %3673 = vrcp.f32 %v2273_v0  ;;  %v2276_v13 = vadd.f32 1.0, %v3654_v50 }
 0xde0   : > { %v3658_v21 = vpop.eup %3657  ;;  %3675 = vrcp.f32 %v2275_v16  ;;  %v2278_v51 = vadd.f32 1.0, %v3656_v17 }
 0xde1   : > { %v3660_v24 = vpop.eup %3659  ;;  %3677 = vrcp.f32 %v2276_v13  ;;  %v2277_v27 = vadd.f32 1.0, %v3658_v21 }
 0xde2   : > { %v3662_v9 = vpop.eup %3661  ;;  %3679 = vrcp.f32 %v2278_v51  ;;  %v2279_v63 = vadd.f32 1.0, %v3660_v24 }
 0xde3   : > { %3681 = vrcp.f32 %v2277_v27  ;;  %v2280_v28 = vadd.f32 1.0, %v3662_v9  ;;  %v3664_v23 = vpop.eup %3663 }
 0xde4   : > { %3683 = vrcp.f32 %v2279_v63  ;;  %v3666_v25 = vpop.eup %3665  ;;  %v2282_v50 = vadd.f32 1.0, %v3664_v23 }
 0xde5   : > { %3685 = vpow2.f32 %v2262_v22  ;;  %v3668_v6 = vpop.eup %3667  ;;  %v2281_v17 = vadd.f32 1.0, %v3666_v25 }
 0xde6   : > { %3687 = vrcp.f32 %v2280_v28  ;;  %v2284_v32 = vadd.f32 1.0, %v3668_v6 }
 0xde7   : > { %v3670_v29 = vpop.eup %3669 }
 0xde8   : > { %v3672_v36 = vpop.eup %3671  ;;  %3689 = vrcp.f32 %v2284_v32  ;;  %v2320_v54 = vmul.f32 %v3670_v29, %v4755_v48 }
 0xde9   : > { %v3674_v40 = vpop.eup %3673  ;;  %3691 = vpow2.f32 %v2268_v31  ;;  %v2322_v60 = vmul.f32 %v3672_v36, %v4758_v52 }
 0xdea   : > { %v3676_v8 = vpop.eup %3675  ;;  %3693 = vpow2.f32 %v2266_v35  ;;  %v2321_v1 = vmul.f32 %v3674_v40, %v4761_v49 }
 0xdeb   : > { %v3678_v43 = vpop.eup %3677  ;;  %3695 = vpow2.f32 %v2270_v39  ;;  %v2323_v0 = vmul.f32 %v3676_v8, %v4764_v33 }
 0xdec   : > { %v3680_v45 = vpop.eup %3679  ;;  %v2324_v57 = vmul.f32 %v3678_v43, %v4768_v14  ;;  %3697 = vrcp.f32 %v2282_v50 }
 0xded   : > { %v3682_v59 = vpop.eup %3681  ;;  %v2326_v61 = vmul.f32 %v3680_v45, %v4771_v46  ;;  %3699 = vrcp.f32 %v2281_v17 }
 0xdee   : > { %v3684_v44 = vpop.eup %3683  ;;  %v2336_v18 = vpack.c.bf16 %v2324_v57, %v2320_v54  ;;  %v2325_v53 = vmul.f32 %v3682_v59, %v4776_v20 }
 0xdef   : > { %v3686_v55 = vpop.eup %3685  ;;  %v2338_v2 = vpack.c.bf16 %v2326_v61, %v2322_v60  ;;  %v2327_v48 = vmul.f32 %v3684_v44, %v4779_v56 }
 0xdf0   : > { %v2337_v14 = vpack.c.bf16 %v2325_v53, %v2321_v1  ;;  %v3688_v16 = vpop.eup %3687  ;;  %v2283_v52 = vadd.f32 1.0, %v3686_v55 }
 0xdf1   : > { %v2339_v13 = vpack.c.bf16 %v2327_v48, %v2323_v0  ;;  %v2328_v21 = vmul.f32 %v3688_v16, %v4785_v30 }
 0xdf2   : > { %2636 = vmatprep.mubr.bf16.mxu1 %v2337_v14  ;;  %v3690_v46 = vpop.eup %3689  ;;  %3701 = vrcp.f32 %v2283_v52 }
 0xdf3   : > { %2685 = vmatprep.mubr.bf16.mxu0 %v2339_v13  ;;  %2637 = vmatmul.mubr.bf16.vlgmr.msra.gmra.mrb[32].mxu1 %v2336_v18  ;;  %v3692_v49 = vpop.eup %3691  ;;  %v2332_v20 = vmul.f32 %v3690_v46, %v4794_v37 }
 0xdf4   : > { %2686 = vmatmul.mubr.bf16.vlgmr.msra.gmra.mrb[32].mxu0 %v2338_v2  ;;  %v3694_v33 = vpop.eup %3693  ;;  %v2286_v56 = vadd.f32 1.0, %v3692_v49 }
 0xdf5   : > { %v3696_v51 = vpop.eup %3695  ;;  %v2285_v24 = vadd.f32 1.0, %v3694_v33  ;;  %v2340_v27 = vpack.c.bf16 %v2332_v20, %v2328_v21 }
 0xdf6   : > { %3703 = vrcp.f32 %v2286_v56  ;;  %v2287_v22 = vadd.f32 1.0, %v3696_v51  ;;  %v3698_v9 = vpop.eup %3697 }
 0xdf7   : > { %3705 = vrcp.f32 %v2285_v24  ;;  %v3700_v63 = vpop.eup %3699  ;;  %v2330_v3 = vmul.f32 %v3698_v9, %v4788_v11  ;;  %v2410_v11 = vsub.s32 5, %v4367_v4 }
 0xdf8   : > { %3707 = vrcp.f32 %v2287_v22  ;;  %v2329_v15 = vmul.f32 %v3700_v63, %v4791_v34 }
 0xdfc   : > { %v3702_v26 = vpop.eup %3701 }
 0xdfd   : > { %v2331_v6 = vmul.f32 %v3702_v26, %v4800_v10 }
 0xe00   : > { %v3704_v28 = vpop.eup %3703 }
 0xe01   : > { %v3706_v30 = vpop.eup %3705  ;;  %v2334_v37 = vmul.f32 %v3704_v28, %v4804_v19  ;;  %v2411_v19 = vrot.slane %v4697_v62, %v2410_v11 }
 0xe02   : > { %v3708_v23 = vpop.eup %3707  ;;  %v2333_v25 = vmul.f32 %v3706_v30, %v4807_v58 }
 0xe03   : > { %v2335_v31 = vmul.f32 %v3708_v23, %v4810_v5  ;;  %v2342_v29 = vpack.c.bf16 %v2334_v37, %v2330_v3 }
 0xe04   : > { %v2341_v32 = vpack.c.bf16 %v2333_v25, %v2329_v15 }
 0xe05   : > { %v2343_v35 = vpack.c.bf16 %v2335_v31, %v2331_v6 }
 0xe06   : > { %2644 = vmatprep.mubr.bf16.mxu1 %v2341_v32 }
 0xe07   : > { %2693 = vmatprep.mubr.bf16.mxu0 %v2343_v35  ;;  %2645 = vmatmul.mubr.bf16.gmra.mrb[36].mxu1 %v2340_v27 }
 0xe08   : > { %2694 = vmatmul.mubr.bf16.gmra.mrb[36].mxu0 %v2342_v29 }
 0xec6   : > { %v3177_v36 = vpop.f32.mrb[32].mxu1 }
 0xec7   : > { %v3205_v39 = vpop.f32.mrb[32].mxu0  ;;  %v3178_v34 = vpop.f32.mrb[33].mxu1 }
 0xec8   : > { %v3179_v40 = vadd.f32 %v3178_v34, %v3177_v36  ;;  %v3206_v58 = vpop.f32.mrb[33].mxu0  ;;  %v3180_v8 = vpop.f32.mrb[34].mxu1 }
 0xec9   : > { %v3207_v10 = vadd.f32 %v3206_v58, %v3205_v39  ;;  %v3208_v43 = vpop.f32.mrb[34].mxu0  ;;  %v3181_v5 = vpop.f32.mrb[35].mxu1 }
 0xeca   : > { %v2639_v45 = vadd.f32 %v3179_v40, %v2411_v19  ;;  %v3182_v54 = vadd.f32 %v3181_v5, %v3180_v8  ;;  %v3209_v57 = vpop.f32.mrb[35].mxu0  ;;  %v2714_v8 = vld [vmem:[%s4883_s4] sm:$0x3] (!%p3101_p8) }
 0xecb   : > { %v3210_v59 = vadd.f32 %v3209_v57, %v3208_v43  ;;  %v2766_v43 = vrot.slane (!%p3101_p8), %v2714_v8, %v4370_v7 }
 0xecc   : > { %v2688_v60 = vadd.f32 %v3207_v10, %v2639_v45  ;;  %v2642_v61 = vadd.f32 %v3182_v54, %v2411_v19  ;;  %v2774_v54 = vrot.slane (!%p3101_p8), %v2714_v8, %v4379_v12 }
 0xece   : > { %v2702_v44 = vadd.f32 %v2688_v60, %v4632_v38  ;;  %v2691_v4 = vadd.f32 %v3210_v59, %v2642_v61 }
 0xed0   : > { %2706 = vst [vmem:[#allocation2] sm:$0xff] %v2702_v44  ;;  %v2703_v62 = vadd.f32 %v2691_v4, %v4634_v41 }
 0xed2   : > { %2707 = vst [vmem:[#allocation2 + $0x8] sm:$0xff] %v2703_v62 }
 0xed7   : > { %v2715_v20 = vld [vmem:[#allocation2] sm:$0xff] (!%p3101_p8) }
 0xed8   : > { %2719 = vadd.xlane.f32.xlu0 (!%p3101_p8), %v2715_v20 }
 0xed9   : > { %v2716_v56 = vld [vmem:[#allocation2 + $0x8] sm:$0xff] (!%p3101_p8) }
 0xeda   : > { %v3183_v1 = vpop.f32.mrb[36].mxu1 }
 0xedb   : > { %v3211_v18 = vpop.f32.mrb[36].mxu0  ;;  %v3184_v53 = vpop.f32.mrb[37].mxu1 }
 0xedc   : > { %v3185_v55 = vadd.f32 %v3184_v53, %v3183_v1  ;;  %v3212_v0 = vpop.f32.mrb[37].mxu0  ;;  %v3186_v2 = vpop.f32.mrb[38].mxu1  ;;  %2721 = vadd.xlane.f32.xlu0 (!%p3101_p8), %v2716_v56 }
 0xedd   : > { %v3213_v48 = vadd.f32 %v3212_v0, %v3211_v18  ;;  %v3214_v50 = vpop.f32.mrb[38].mxu0  ;;  %v3187_v14 = vpop.f32.mrb[39].mxu1 }
 0xede   : > { %v2647_v16 = vadd.f32 %v3185_v55, %v2411_v19  ;;  %v3188_v17 = vadd.f32 %v3187_v14, %v3186_v2  ;;  %v3215_v13 = vpop.f32.mrb[39].mxu0 }
 0xedf   : > { %v3216_v52 = vadd.f32 %v3215_v13, %v3214_v50 }
 0xee0   : > { %v2696_v46 = vadd.f32 %v3213_v48, %v2647_v16  ;;  %v2650_v38 = vadd.f32 %v3188_v17, %v2411_v19  ;;  %2713 = sbr.rel (%p3101_p8) target bundleno = 4136 (0x1028), region = 96 }
 0xee2   : > { %v2704_v49 = vadd.f32 %v2696_v46, %v4637_v42  ;;  %v2699_v21 = vadd.f32 %v3216_v52, %v2650_v38 }
 0xee4   : > { %2708 = vst [vmem:[#allocation2 + $0x10] sm:$0xff] %v2704_v49  ;;  %v2705_v41 = vadd.f32 %v2699_v21, %v4641_v47 }
 0xee6   : > { %2709 = vst [vmem:[#allocation2 + $0x18] sm:$0xff] %v2705_v41 }
 0xeeb   : > { %v2717_v33 = vld [vmem:[#allocation2 + $0x10] sm:$0xff] }
 0xeec   : > { %2723 = vadd.xlane.f32.xlu1 %v2717_v33 }
 0xeed   : > { %v2718_v51 = vld [vmem:[#allocation2 + $0x18] sm:$0xff] }
 0xef0   : > { %2725 = vadd.xlane.f32.xlu1 %v2718_v51 }
 0xf65   : > { %v2720_v24 = vpop.xlane.xlu0 %2719 }
 0xf66   : > { %v2727_v22 = vmul.f32 0.0078125, %v2720_v24 }
 0xf68   : > { %v2731_v9 = vsub.f32 %v2715_v20, %v2727_v22 }
 0xf69   : > { %v2722_v26 = vpop.xlane.xlu0 %2721 }
 0xf6a   : > { %v2728_v28 = vmul.f32 0.0078125, %v2722_v26  ;;  %v2735_v30 = vmul.f32 %v2731_v9, %v2731_v9 }
 0xf6c   : > { %v2732_v37 = vsub.f32 %v2716_v56, %v2728_v28  ;;  %2739 = vadd.xlane.f32.xlu0 %v2735_v30 }
 0xf6e   : > { %v2736_v25 = vmul.f32 %v2732_v37, %v2732_v37 }
 0xf70   : > { %2741 = vadd.xlane.f32.xlu1 %v2736_v25 }
 0xf79   : > { %v2724_v27 = vpop.xlane.xlu1 %2723 }
 0xf7a   : > { %v2729_v42 = vmul.f32 0.0078125, %v2724_v27 }
 0xf7c   : > { %v2733_v63 = vsub.f32 %v2717_v33, %v2729_v42 }
 0xf7d   : > { %v2726_v47 = vpop.xlane.xlu1 %2725 }
 0xf7e   : > { %v2730_v3 = vmul.f32 0.0078125, %v2726_v47  ;;  %v2737_v15 = vmul.f32 %v2733_v63, %v2733_v63 }
 0xf80   : > { %v2734_v23 = vsub.f32 %v2718_v51, %v2730_v3  ;;  %2743 = vadd.xlane.f32.xlu0 %v2737_v15 }
 0xf82   : > { %v2738_v6 = vmul.f32 %v2734_v23, %v2734_v23 }
 0xf84   : > { %2745 = vadd.xlane.f32.xlu1 %v2738_v6 }
 0xff9   : > { %v2740_v31 = vpop.xlane.xlu0 %2739 }
 0xffa   : > { %v2747_v29 = vmul.f32 0.0078125, %v2740_v31 }
 0xffc   : > { %v2751_v32 = vadd.f32 1e-05, %v2747_v29 }
 0xffd   : > { %v2742_v35 = vpop.xlane.xlu1 %2741 }
 0xffe   : > { %3714 = vrsqrt.f32 %v2751_v32  ;;  %v2748_v36 = vmul.f32 0.0078125, %v2742_v35 }
0x1000   : > { %v2752_v39 = vadd.f32 1e-05, %v2748_v36 }
0x1002   : > { %3716 = vrsqrt.f32 %v2752_v39 }
0x1008   : > { %v3715_v5 = vpop.eup %3714 }
0x1009   : > { %v2759_v45 = vmul.f32 %v3715_v5, %v2731_v9 }
0x100b   : > { %v2767_v57 = vmul.f32 %v2766_v43, %v2759_v45 }
0x100c   : > { %v3717_v59 = vpop.eup %3716 }
0x100d   : > { %v2744_v11 = vpop.xlane.xlu0 %2743  ;;  %v2775_v61 = vadd.f32 %v2774_v54, %v2767_v57  ;;  %v2760_v44 = vmul.f32 %v3717_v59, %v2732_v37 }
0x100e   : > { %v2749_v19 = vmul.f32 0.0078125, %v2744_v11 }
0x100f   : > { %2779 = vst [vmem:[#allocation13] sm:$0xff] %v2775_v61  ;;  %v2768_v62 = vmul.f32 %v2766_v43, %v2760_v44 }
0x1010   : > { %v2753_v34 = vadd.f32 1e-05, %v2749_v19 }
0x1011   : > { %v2746_v40 = vpop.xlane.xlu1 %2745  ;;  %v2776_v53 = vadd.f32 %v2774_v54, %v2768_v62 }
0x1012   : > { %v2750_v58 = vmul.f32 0.0078125, %v2746_v40  ;;  %3718 = vrsqrt.f32 %v2753_v34 }
0x1013   : > { %2780 = vst [vmem:[#allocation13 + $0x8] sm:$0xff] %v2776_v53 }
0x1014   : > { %v2754_v10 = vadd.f32 1e-05, %v2750_v58 }
0x1016   : > { %3720 = vrsqrt.f32 %v2754_v10 }
0x101c   : > { %v3719_v60 = vpop.eup %3718 }
0x101d   : > { %v2761_v4 = vmul.f32 %v3719_v60, %v2733_v63 }
0x101f   : > { %v2769_v18 = vmul.f32 %v2766_v43, %v2761_v4 }
0x1020   : > { %v3721_v1 = vpop.eup %3720 }
0x1021   : > { %v2762_v55 = vmul.f32 %v3721_v1, %v2734_v23  ;;  %v2777_v0 = vadd.f32 %v2774_v54, %v2769_v18 }
0x1023   : > { %v2770_v2 = vmul.f32 %v2766_v43, %v2762_v55  ;;  %2781 = vst [vmem:[#allocation13 + $0x10] sm:$0xff] %v2777_v0 }
0x1025   : > { %v2778_v7 = vadd.f32 %v2774_v54, %v2770_v2 }
0x1027   : > { %2782 = vst [vmem:[#allocation13 + $0x18] sm:$0xff] %v2778_v7 }
0x1028 PF: > { %p3359_p10 = scmp.eq.s32.totalorder %s4070_s29, 3  ;;  %s3980_s24 = smov [#allocation13]  }
0x1029   : > { %s2789_s0 = sshll.u32 %s3980_s24, 4  ;;  %s2790_s0 = int_to_ptr.vmem [resolvable:$true] %s2789_s0 }
0x102a   : > { %s3878_s18 = scalar_lea.vmem %s2790_s0, 512  ;;  %p3885_p2 = scmp.lt.s32.totalorder %s2790_s0, %s2790_s0 }
0x102b   : > { %p3879_p11 = scmp.ne.s32.totalorder %s2790_s0, %s3878_s18  ;;  %p3886_p4 = scmp.lt.s32.totalorder %s3878_s18, %s3878_s18 }
0x102d   : > { %p3880_p6 = pnand %p3879_p11, %p3359_p10  ;;  %p3887_p0 = por %p3886_p4, %p3885_p2 }
0x102f   : > { %p3881_p9 = pneg %p3880_p6 }
0x1031   : > { %p3888_p5 = pnand %p3887_p0, %p3881_p9 }
0x1033   : > { %3891 = shalt.err (!%p3888_p5)
}
0x1034   : > { %s4917_s23 = sld [smem:[#allocation31_spill]] }
0x103a   : > { %s3892_s21 = scalar_lea.hbm %s4917_s23, 512 }
0x103b   : > { %p3893_p3 = scmp.ne.s32.totalorder %s4917_s23, %s3892_s21  ;;  %p3898_p12 = scmp.lt.u32.totalorder %s3892_s21, %s4917_s23 }
0x103d   : > { %p3894_p7 = pnand %p3893_p3, %p3359_p10 }
0x103f   : > { %p3895_p1 = pneg %p3894_p7 }
0x1041   : > { %p3900_p13 = pnand %p3898_p12, %p3895_p1 }
0x1043   : > { %3903 = shalt.err (!%p3900_p13)
}
0x1044   : > { %s3981_s16 = smov 128   ;;  %s3982_s19 = smov 8  }
0x1045   : > { %3342 = dma.vmem_to_hbm [thread:$0]  (%p3359_p10), %s2790_s0, 512, %s4917_s23, [#allocation7], %s3981_s16, %s3981_s16, %s3982_s19  }
0x1046   : > { %3941 = dma.done.wait (%p3359_p10), [#allocation7], 512  }
0x1047   : > { %3943 = vsyncadd (%p3359_p10), [#allocation7], 4294966784 }
0x1048 PF: > { %s4918_s28 = sld [smem:[#allocation26_spill]]  ;;  %s4919_s20 = sld [smem:[#allocation25_spill]] }
0x1049   : > { %s4920_s27 = sld [smem:[#allocation27_spill]]  ;;  %s4921_s0 = smov %s3950_s26 }
0x104e   : > { %p35_p8 = scmp.ge.s32.totalorder %s4918_s28, 6   ;;  %s4922_s26 = smov %s4919_s20 }
0x1050   :  { %37 = sbr.rel (!%p35_p8) target bundleno = 25 (0x19), region = 176 }
0x1057   :  { %2805 = vsyncpa [#allocation6], 1 }
0x1058   :  { %2807 = vsyncpa [#allocation6 + $0x1], 1 }
0x1059   :  { %2808 = vsyncpa [#allocation9], 1 }
0x105a   :  { %2810 = vsyncpa [#allocation9 + $0x1], 1 }
0x105b   :  { %2811 = vsyncpa [#allocation12], 1 }
0x105c   :  { %2813 = vsyncpa [#allocation12 + $0x1], 1 }
0x105d   :  { %2814 = vsyncpa [#allocation7], 1 }
0x105e   :  { %2816 = vsyncpa [#allocation7 + $0x1], 1 }

</bundles_post_ra>
